<compile_context>
chip_gen: v5e
topology: v5e:2x2
jax: 0.10.0
libtpu: 0.0.40
codegen_flags: <defaults>
</compile_context>

<pallas_src>
import functools

import jax
import jax.numpy as jnp
from jax import lax
from jax.experimental import pallas as pl
from jax.experimental.pallas import tpu as pltpu


def _round_up(x, m):
    return ((x + m - 1) // m) * m


def _pad_lanes(c):
    return _round_up(max(c, 128), 128)


# --------------------------------------------------------------------------
# Tiled matmul kernel with fused BN (+ residual) + ReLU epilogue
# --------------------------------------------------------------------------

def _mm_bn_kernel(a_ref, b_ref, s_ref, c_ref, o_ref, acc_ref, *, relu):
    @pl.when(pl.program_id(2) == 0)
    def _():
        acc_ref[...] = jnp.zeros_like(acc_ref)

    acc_ref[...] += jnp.dot(a_ref[...], b_ref[...],
                            preferred_element_type=jnp.float32)

    @pl.when(pl.program_id(2) == pl.num_programs(2) - 1)
    def _():
        y = acc_ref[...] * s_ref[...] + c_ref[...]
        if relu:
            y = jnp.maximum(y, 0.0)
        o_ref[...] = y.astype(o_ref.dtype)


def _mm_bn_res_kernel(a_ref, b_ref, s_ref, c_ref, r_ref, o_ref, acc_ref):
    @pl.when(pl.program_id(2) == 0)
    def _():
        acc_ref[...] = jnp.zeros_like(acc_ref)

    acc_ref[...] += jnp.dot(a_ref[...], b_ref[...],
                            preferred_element_type=jnp.float32)

    @pl.when(pl.program_id(2) == pl.num_programs(2) - 1)
    def _():
        y = acc_ref[...] * s_ref[...] + c_ref[...] + r_ref[...].astype(jnp.float32)
        o_ref[...] = jnp.maximum(y, 0.0).astype(o_ref.dtype)


def matmul_bn(a, b, scale, bias, *, relu, residual=None, out_dtype=jnp.bfloat16):
    """O = act((A @ B) * scale + bias [+ residual]).  A:(M,K) bf16, B:(K,N) bf16."""
    M, K = a.shape
    K2, N = b.shape
    assert K == K2 and K % 128 == 0 and N % 128 == 0, (a.shape, b.shape)

    Mp = _round_up(M, 8)
    tm = next(t for t in (512, 256, 128, 64, 32, 16, 8) if Mp % t == 0)
    tn = 256 if N % 256 == 0 else 128
    tk = 512 if K % 512 == 0 else (256 if K % 256 == 0 else 128)

    if Mp != M:  # ragged tail fallback; not hit for the shapes used here
        a = jnp.pad(a, ((0, Mp - M), (0, 0)))
        if residual is not None:
            residual = jnp.pad(residual, ((0, Mp - M), (0, 0)))

    grid = (Mp // tm, N // tn, K // tk)
    in_specs = [
        pl.BlockSpec((tm, tk), lambda i, j, k: (i, k)),
        pl.BlockSpec((tk, tn), lambda i, j, k: (k, j)),
        pl.BlockSpec((1, tn), lambda i, j, k: (0, j)),
        pl.BlockSpec((1, tn), lambda i, j, k: (0, j)),
    ]
    args = [a, b, scale.reshape(1, N), bias.reshape(1, N)]
    if residual is None:
        kernel = functools.partial(_mm_bn_kernel, relu=relu)
    else:
        kernel = _mm_bn_res_kernel
        in_specs.append(pl.BlockSpec((tm, tn), lambda i, j, k: (i, j)))
        args.append(residual)

    out = pl.pallas_call(
        kernel,
        out_shape=jax.ShapeDtypeStruct((Mp, N), out_dtype),
        grid=grid,
        in_specs=in_specs,
        out_specs=pl.BlockSpec((tm, tn), lambda i, j, k: (i, j)),
        scratch_shapes=[pltpu.VMEM((tm, tn), jnp.float32)],
        # Modest tiles -> no vmem_limit_bytes override; fits v7x's 64 MiB.
        compiler_params=pltpu.CompilerParams(
            dimension_semantics=("parallel", "parallel", "arbitrary")),
    )(*args)
    return out[:M] if Mp != M else out


# --------------------------------------------------------------------------
# 3x3 conv (stride 1, pad 1) with in-kernel nine-tap accumulation (no im2col)
# --------------------------------------------------------------------------

def _conv3x3_kernel(x_ref, w_ref, s_ref, c_ref, o_ref, acc_ref, *, wp, mq):
    for t in range(9):
        kh, kw = divmod(t, 3)
        off = kh * wp + kw                      # uniform tap shift on flat rows
        contrib = jnp.dot(x_ref[0, off:off + mq, :], w_ref[t],
                          preferred_element_type=jnp.float32)
        if t == 0:
            acc_ref[...] = contrib
        else:
            acc_ref[...] += contrib
    y = acc_ref[...] * s_ref[...] + c_ref[...]
    o_ref[0, :, :] = jnp.maximum(y, 0.0).astype(o_ref.dtype)


def conv3x3_bn_relu(x_flat, w9, scale, bias, *, ho, wo):
    """3x3 conv, stride 1, padding 1, fused BN + ReLU.

    x_flat: (N, (ho+2)*(wo+2) + 2, Cin) bf16 -- zero-padded activation flattened
            per image in row-major (h, w) order plus 2 zero tail rows.
    Output: (N, ho*(wo+2), Cout) bf16 on the (ho, wo+2) raster; the last two
            columns of every row are junk and are stripped by the caller.
    """
    n, rows, cin = x_flat.shape
    cout = w9.shape[-1]
    wp = wo + 2
    mq = ho * wp
    assert rows == (ho + 2) * wp + 2 and cin % 128 == 0 and cout % 128 == 0
    tn = 256 if cout % 256 == 0 else 128
    kernel = functools.partial(_conv3x3_kernel, wp=wp, mq=mq)
    return pl.pallas_call(
        kernel,
        out_shape=jax.ShapeDtypeStruct((n, mq, cout), jnp.bfloat16),
        grid=(n, cout // tn),
        in_specs=[
            pl.BlockSpec((1, rows, cin), lambda i, j: (i, 0, 0)),
            pl.BlockSpec((9, cin, tn), lambda i, j: (0, 0, j)),
            pl.BlockSpec((1, tn), lambda i, j: (0, j)),
            pl.BlockSpec((1, tn), lambda i, j: (0, j)),
        ],
        out_specs=pl.BlockSpec((1, mq, tn), lambda i, j: (i, 0, j)),
        scratch_shapes=[pltpu.VMEM((mq, tn), jnp.float32)],
        compiler_params=pltpu.CompilerParams(
            dimension_semantics=("parallel", "parallel")),
    )(x_flat, w9, scale.reshape(1, cout), bias.reshape(1, cout))


# --------------------------------------------------------------------------
# Parameters (deterministic, synthetic) and kernel-ready preparation
# --------------------------------------------------------------------------

def make_block_params(key, in_ch, out_ch, downsample, eps=1e-5):
    mid = out_ch // 4
    identity = (in_ch == out_ch) and not downsample
    ks = iter(jax.random.split(key, 16))

    def conv_w(k, cout, cin, ksz):
        std = (2.0 / (cin * ksz * ksz)) ** 0.5
        return jax.random.normal(k, (cout, cin, ksz, ksz), jnp.float32) * std

    def bn_fold(k, c):
        k1, k2, k3, k4 = jax.random.split(k, 4)
        gamma = 1.0 + 0.1 * jax.random.normal(k1, (c,), jnp.float32)
        beta = 0.1 * jax.random.normal(k2, (c,), jnp.float32)
        mean = 0.1 * jax.random.normal(k3, (c,), jnp.float32)
        var = 0.5 + jax.random.uniform(k4, (c,), jnp.float32)
        scale = gamma / jnp.sqrt(var + eps)
        return scale, beta - mean * scale

    raw = {
        "w1": conv_w(next(ks), mid, in_ch, 1), "bn1": bn_fold(next(ks), mid),
        "w2": conv_w(next(ks), mid, mid, 3),   "bn2": bn_fold(next(ks), mid),
        "w3": conv_w(next(ks), out_ch, mid, 1), "bn3": bn_fold(next(ks), out_ch),
    }
    if not identity:
        raw["wp"] = conv_w(next(ks), out_ch, in_ch, 1)
        raw["bnp"] = bn_fold(next(ks), out_ch)
    meta = dict(in_ch=in_ch, out_ch=out_ch, mid=mid,
                stride=2 if downsample else 1, identity=identity)
    return raw, meta


def prepare_block_params(raw, meta):
    """Pad channels to multiples of 128, fold layouts, cast weights to bf16."""
    in_ch, out_ch, mid = meta["in_ch"], meta["out_ch"], meta["mid"]
    cin_p, mid_p, cout_p = _pad_lanes(in_ch), _pad_lanes(mid), _pad_lanes(out_ch)

    def pad_vec(v, cp):
        return jnp.pad(v, (0, cp - v.shape[0])).reshape(1, cp)

    def mat_1x1(w, ci_p, co_p):            # OIHW (co,ci,1,1) -> (ci_p, co_p) bf16
        m = jnp.transpose(w[:, :, 0, 0], (1, 0))
        m = jnp.pad(m, ((0, ci_p - m.shape[0]), (0, co_p - m.shape[1])))
        return m.astype(jnp.bfloat16)

    def mat_3x3(w, ci_p, co_p):            # OIHW (co,ci,3,3) -> (9, ci_p, co_p) bf16
        m = jnp.transpose(w, (2, 3, 1, 0)).reshape(9, w.shape[1], w.shape[0])
        m = jnp.pad(m, ((0, 0), (0, ci_p - m.shape[1]), (0, co_p - m.shape[2])))
        return m.astype(jnp.bfloat16)

    prep = dict(cin=in_ch, cout=out_ch, mid=mid,
                cin_p=cin_p, mid_p=mid_p, cout_p=cout_p,
                stride=meta["stride"], identity=meta["identity"])
    prep["w1"] = mat_1x1(raw["w1"], cin_p, mid_p)
    prep["s1"], prep["b1"] = pad_vec(raw["bn1"][0], mid_p), pad_vec(raw["bn1"][1], mid_p)
    prep["w2"] = mat_3x3(raw["w2"], mid_p, mid_p)
    prep["s2"], prep["b2"] = pad_vec(raw["bn2"][0], mid_p), pad_vec(raw["bn2"][1], mid_p)
    prep["w3"] = mat_1x1(raw["w3"], mid_p, cout_p)
    prep["s3"], prep["b3"] = pad_vec(raw["bn3"][0], cout_p), pad_vec(raw["bn3"][1], cout_p)
    if not meta["identity"]:
        prep["wp"] = mat_1x1(raw["wp"], cin_p, cout_p)
        prep["sp"], prep["bp"] = pad_vec(raw["bnp"][0], cout_p), pad_vec(raw["bnp"][1], cout_p)
    return prep


# --------------------------------------------------------------------------
# Forward pass (Pallas) and pure-JAX reference
# --------------------------------------------------------------------------

def bottleneck_forward(prep, x_nchw):
    stride, identity = prep["stride"], prep["identity"]
    x = jnp.transpose(x_nchw, (0, 2, 3, 1)).astype(jnp.float32)        # NHWC
    if stride > 1:
        x = x[:, ::stride, ::stride, :]                                 # 1x1-conv stride
    n, ho, wo, cin = x.shape
    if cin != prep["cin_p"]:
        x = jnp.pad(x, ((0, 0), (0, 0), (0, 0), (0, prep["cin_p"] - cin)))
    x_flat32 = x.reshape(n * ho * wo, prep["cin_p"])
    x_flat = x_flat32.astype(jnp.bfloat16)

    # --- main path ---------------------------------------------------------
    y1 = matmul_bn(x_flat, prep["w1"], prep["s1"], prep["b1"], relu=True)

    # layout for the fused-im2col 3x3 conv: zero border + row-major flatten
    mid_p = prep["mid_p"]
    y1 = y1.reshape(n, ho, wo, mid_p)
    y1 = jnp.pad(y1, ((0, 0), (1, 1), (1, 1), (0, 0)))
    y1 = jnp.pad(y1.reshape(n, (ho + 2) * (wo + 2), mid_p), ((0, 0), (0, 2), (0, 0)))

    y2 = conv3x3_bn_relu(y1, prep["w2"], prep["s2"], prep["b2"], ho=ho, wo=wo)
    # strip the 2 junk columns of the (ho, wo+2) raster (tiny pass on the mid tensor)
    y2 = y2.reshape(n, ho, wo + 2, mid_p)[:, :, :wo, :].reshape(n * ho * wo, mid_p)

    # --- residual path -------------------------------------------------------
    if identity:
        r = x_flat32                                                    # f32 passthrough
    else:
        r = matmul_bn(x_flat, prep["wp"], prep["sp"], prep["bp"], relu=False)

    # --- final 1x1 conv + BN with residual add + ReLU fused in the epilogue --
    y3 = matmul_bn(y2, prep["w3"], prep["s3"], prep["b3"], relu=True,
                   residual=r, out_dtype=jnp.float32)

    y3 = y3.reshape(n, ho, wo, prep["cout_p"])[:, :, :, :prep["cout"]]
    return jnp.transpose(y3, (0, 3, 1, 2))                              # NCHW


def bottleneck_reference(raw, meta, x_nchw):
    stride = meta["stride"]

    def conv(x, w, s, p):
        return lax.conv_general_dilated(
            x, w, (s, s), [(p, p), (p, p)],
            dimension_numbers=("NCHW", "OIHW", "NCHW"),
            precision=lax.Precision.HIGHEST)

    def bn(x, sb):
        s, b = sb
        return x * s[None, :, None, None] + b[None, :, None, None]

    y = jax.nn.relu(bn(conv(x_nchw, raw["w1"], stride, 0), raw["bn1"]))
    y = jax.nn.relu(bn(conv(y, raw["w2"], 1, 1), raw["bn2"]))
    y = bn(conv(y, raw["w3"], 1, 0), raw["bn3"])
    r = x_nchw if meta["identity"] else bn(conv(x_nchw, raw["wp"], stride, 0), raw["bnp"])
    return jax.nn.relu(y + r)


# --------------------------------------------------------------------------

if __name__ == "__main__":
    key = jax.random.PRNGKey(0)
    k_p1, k_p2, k_x1, k_x2 = jax.random.split(key, 4)

    # Case 1: projection residual with downsampling (in != out, stride 2).
    raw1, meta1 = make_block_params(k_p1, in_ch=64, out_ch=256, downsample=True)
    x1 = jax.random.normal(k_x1, (2, 64, 16, 16), jnp.float32)

    # Case 2: identity residual (in == out, no downsample).
    raw2, meta2 = make_block_params(k_p2, in_ch=256, out_ch=256, downsample=False)
    x2 = jax.random.normal(k_x2, (2, 256, 8, 8), jnp.float32)

    for raw, meta, x in ((raw1, meta1, x1), (raw2, meta2, x2)):
        prep = prepare_block_params(raw, meta)
        fwd = jax.jit(functools.partial(bottleneck_forward, prep))
        out = jax.block_until_ready(fwd(x))
        ref = bottleneck_reference(raw, meta, x)
        assert out.shape == ref.shape, (out.shape, ref.shape)
        assert bool(jnp.all(jnp.isfinite(out))), "non-finite output"
        err = float(jnp.max(jnp.abs(out - ref)) / (jnp.max(jnp.abs(ref)) + 1e-6))
        assert err < 5e-2, f"mismatch vs reference: rel-max err {err:.4f}"

    print("KERNEL_OK")
</pallas_src>

<mosaic_0001>
module attributes {stable_mosaic.version = 11 : i64} {
  func.func @_mm_bn_kernel(%arg0: i32, %arg1: i32, %arg2: i32, %arg3: memref<128x128xbf16, #tpu.memory_space<vmem>>, %arg4: memref<128x128xbf16, #tpu.memory_space<vmem>>, %arg5: memref<1x128xf32, #tpu.memory_space<vmem>>, %arg6: memref<1x128xf32, #tpu.memory_space<vmem>>, %arg7: memref<128x128xbf16, #tpu.memory_space<vmem>>, %arg8: memref<128x128xf32, #tpu.memory_space<vmem>>) attributes {dimension_semantics = [#tpu.dimension_semantics<parallel>, #tpu.dimension_semantics<parallel>, #tpu.dimension_semantics<arbitrary>], iteration_bounds = array<i64: 1, 1, 1>, scalar_prefetch = 0 : i64, scratch_operands = 1 : i64, tpu.core_type = #tpu.core_type<tc>, window_params = [{transform_indices = @transform_0, window_bounds = array<i64: 128, 128>}, {transform_indices = @transform_1, window_bounds = array<i64: 128, 128>}, {transform_indices = @transform_2, window_bounds = array<i64: 1, 128>}, {transform_indices = @transform_3, window_bounds = array<i64: 1, 128>}, {transform_indices = @transform_4, window_bounds = array<i64: 128, 128>}]} {
    %c0_i32 = arith.constant 0 : i32
    %0 = arith.cmpi eq, %arg2, %c0_i32 : i32
    %1 = arith.extui %0 : i1 to i32
    %c0_i32_0 = arith.constant 0 : i32
    %2 = arith.cmpi ne, %1, %c0_i32_0 : i32
    scf.if %2 {
      %cst_10 = arith.constant 0.000000e+00 : f32
      %12 = vector.broadcast %cst_10 : f32 to vector<128x128xf32>
      %c0_11 = arith.constant 0 : index
      %c0_12 = arith.constant 0 : index
      %13 = vector.load %arg8[%c0_11, %c0_12] : memref<128x128xf32, #tpu.memory_space<vmem>>, vector<128x128xf32>
      tpu.vector_store %arg8[%c0_11, %c0_12], %12 {strides = array<i32>} : memref<128x128xf32, #tpu.memory_space<vmem>>, vector<128x128xf32>,
    } else {
    }
    %c0 = arith.constant 0 : index
    %c0_1 = arith.constant 0 : index
    %3 = vector.load %arg8[%c0, %c0_1] : memref<128x128xf32, #tpu.memory_space<vmem>>, vector<128x128xf32>
    %c0_2 = arith.constant 0 : index
    %c0_3 = arith.constant 0 : index
    %4 = vector.load %arg3[%c0_2, %c0_3] : memref<128x128xbf16, #tpu.memory_space<vmem>>, vector<128x128xbf16>
    %c0_4 = arith.constant 0 : index
    %c0_5 = arith.constant 0 : index
    %5 = vector.load %arg4[%c0_4, %c0_5] : memref<128x128xbf16, #tpu.memory_space<vmem>>, vector<128x128xbf16>
    %cst = arith.constant dense<0.000000e+00> : vector<128x128xf32>
    %6 = tpu.matmul %4, %5, %cst {dimension_numbers = #tpu.dot_dimension_numbers<[1], [0], [0], [1], [0, 0, 1, 1], [], []>} : vector<128x128xbf16>, vector<128x128xbf16>, vector<128x128xf32> -> vector<128x128xf32>
    %7 = arith.addf %3, %6 : vector<128x128xf32>
    %c0_6 = arith.constant 0 : index
    %c0_7 = arith.constant 0 : index
    %8 = vector.load %arg8[%c0_6, %c0_7] : memref<128x128xf32, #tpu.memory_space<vmem>>, vector<128x128xf32>
    tpu.vector_store %arg8[%c0_6, %c0_7], %7 {strides = array<i32>} : memref<128x128xf32, #tpu.memory_space<vmem>>, vector<128x128xf32>,
    %c0_i32_8 = arith.constant 0 : i32
    %9 = arith.cmpi eq, %arg2, %c0_i32_8 : i32
    %10 = arith.extui %9 : i1 to i32
    %c0_i32_9 = arith.constant 0 : i32
    %11 = arith.cmpi ne, %10, %c0_i32_9 : i32
    scf.if %11 {
      %c0_10 = arith.constant 0 : index
      %c0_11 = arith.constant 0 : index
      %12 = vector.load %arg8[%c0_10, %c0_11] : memref<128x128xf32, #tpu.memory_space<vmem>>, vector<128x128xf32>
      %c0_12 = arith.constant 0 : index
      %c0_13 = arith.constant 0 : index
      %13 = vector.load %arg5[%c0_12, %c0_13] : memref<1x128xf32, #tpu.memory_space<vmem>>, vector<1x128xf32>
      %14 = vector.broadcast %13 : vector<1x128xf32> to vector<128x128xf32>
      %15 = arith.mulf %12, %14 : vector<128x128xf32>
      %c0_14 = arith.constant 0 : index
      %c0_15 = arith.constant 0 : index
      %16 = vector.load %arg6[%c0_14, %c0_15] : memref<1x128xf32, #tpu.memory_space<vmem>>, vector<1x128xf32>
      %17 = vector.broadcast %16 : vector<1x128xf32> to vector<128x128xf32>
      %18 = arith.addf %15, %17 : vector<128x128xf32>
      %cst_16 = arith.constant 0.000000e+00 : f32
      %19 = vector.broadcast %cst_16 : f32 to vector<128x128xf32>
      %20 = arith.maximumf %18, %19 : vector<128x128xf32>
      %21 = arith.truncf %20 : vector<128x128xf32> to vector<128x128xbf16>
      %c0_17 = arith.constant 0 : index
      %c0_18 = arith.constant 0 : index
      %22 = vector.load %arg7[%c0_17, %c0_18] : memref<128x128xbf16, #tpu.memory_space<vmem>>, vector<128x128xbf16>
      tpu.vector_store %arg7[%c0_17, %c0_18], %21 {strides = array<i32>} : memref<128x128xbf16, #tpu.memory_space<vmem>>, vector<128x128xbf16>,
    } else {
    }
    return
  }
  func.func @transform_0(%arg0: i32, %arg1: i32, %arg2: i32) -> (i32, i32) {
    %c0_i32 = arith.constant 0 : i32
    return %arg0, %arg2 : i32, i32
  }
  func.func @transform_1(%arg0: i32, %arg1: i32, %arg2: i32) -> (i32, i32) {
    %c0_i32 = arith.constant 0 : i32
    return %arg2, %arg1 : i32, i32
  }
  func.func @transform_2(%arg0: i32, %arg1: i32, %arg2: i32) -> (i32, i32) {
    %c0_i32 = arith.constant 0 : i32
    %c0_i32_0 = arith.constant 0 : i32
    return %c0_i32, %arg1 : i32, i32
  }
  func.func @transform_3(%arg0: i32, %arg1: i32, %arg2: i32) -> (i32, i32) {
    %c0_i32 = arith.constant 0 : i32
    %c0_i32_0 = arith.constant 0 : i32
    return %c0_i32, %arg1 : i32, i32
  }
  func.func @transform_4(%arg0: i32, %arg1: i32, %arg2: i32) -> (i32, i32) {
    %c0_i32 = arith.constant 0 : i32
    return %arg0, %arg1 : i32, i32
  }
}

module attributes {stable_mosaic.version = 11 : i64} {
  func.func @_conv3x3_kernel(%arg0: i32, %arg1: i32, %arg2: memref<1x102x128xbf16, #tpu.memory_space<vmem>>, %arg3: memref<9x128x128xbf16, #tpu.memory_space<vmem>>, %arg4: memref<1x128xf32, #tpu.memory_space<vmem>>, %arg5: memref<1x128xf32, #tpu.memory_space<vmem>>, %arg6: memref<1x80x128xbf16, #tpu.memory_space<vmem>>, %arg7: memref<80x128xf32, #tpu.memory_space<vmem>>) attributes {dimension_semantics = [#tpu.dimension_semantics<parallel>, #tpu.dimension_semantics<parallel>], iteration_bounds = array<i64: 2, 1>, scalar_prefetch = 0 : i64, scratch_operands = 1 : i64, tpu.core_type = #tpu.core_type<tc>, window_params = [{transform_indices = @transform_0, window_bounds = array<i64: 1, 102, 128>}, {transform_indices = @transform_1, window_bounds = array<i64: 9, 128, 128>}, {transform_indices = @transform_2, window_bounds = array<i64: 1, 128>}, {transform_indices = @transform_3, window_bounds = array<i64: 1, 128>}, {transform_indices = @transform_4, window_bounds = array<i64: 1, 80, 128>}]} {
    %c0 = arith.constant 0 : index
    %c0_0 = arith.constant 0 : index
    %c0_1 = arith.constant 0 : index
    %0 = vector.load %arg2[%c0, %c0_0, %c0_1] : memref<1x102x128xbf16, #tpu.memory_space<vmem>>, vector<1x80x128xbf16>
    %1 = vector.shape_cast %0 : vector<1x80x128xbf16> to vector<80x128xbf16>
    %c0_2 = arith.constant 0 : index
    %c0_3 = arith.constant 0 : index
    %c0_4 = arith.constant 0 : index
    %2 = vector.load %arg3[%c0_2, %c0_3, %c0_4] : memref<9x128x128xbf16, #tpu.memory_space<vmem>>, vector<1x128x128xbf16>
    %3 = vector.shape_cast %2 : vector<1x128x128xbf16> to vector<128x128xbf16>
    %cst = arith.constant dense<0.000000e+00> : vector<80x128xf32>
    %4 = tpu.matmul %1, %3, %cst {dimension_numbers = #tpu.dot_dimension_numbers<[1], [0], [0], [1], [0, 0, 1, 1], [], []>} : vector<80x128xbf16>, vector<128x128xbf16>, vector<80x128xf32> -> vector<80x128xf32>
    %c0_5 = arith.constant 0 : index
    %c0_6 = arith.constant 0 : index
    %5 = vector.load %arg7[%c0_5, %c0_6] : memref<80x128xf32, #tpu.memory_space<vmem>>, vector<80x128xf32>
    tpu.vector_store %arg7[%c0_5, %c0_6], %4 {strides = array<i32>} : memref<80x128xf32, #tpu.memory_space<vmem>>, vector<80x128xf32>,
    %c0_7 = arith.constant 0 : index
    %c1 = arith.constant 1 : index
    %c0_8 = arith.constant 0 : index
    %6 = vector.load %arg2[%c0_7, %c1, %c0_8] : memref<1x102x128xbf16, #tpu.memory_space<vmem>>, vector<1x80x128xbf16>
    %7 = vector.shape_cast %6 : vector<1x80x128xbf16> to vector<80x128xbf16>
    %c1_9 = arith.constant 1 : index
    %c0_10 = arith.constant 0 : index
    %c0_11 = arith.constant 0 : index
    %8 = vector.load %arg3[%c1_9, %c0_10, %c0_11] : memref<9x128x128xbf16, #tpu.memory_space<vmem>>, vector<1x128x128xbf16>
    %9 = vector.shape_cast %8 : vector<1x128x128xbf16> to vector<128x128xbf16>
    %cst_12 = arith.constant dense<0.000000e+00> : vector<80x128xf32>
    %10 = tpu.matmul %7, %9, %cst_12 {dimension_numbers = #tpu.dot_dimension_numbers<[1], [0], [0], [1], [0, 0, 1, 1], [], []>} : vector<80x128xbf16>, vector<128x128xbf16>, vector<80x128xf32> -> vector<80x128xf32>
    %c0_13 = arith.constant 0 : index
    %c0_14 = arith.constant 0 : index
    %11 = vector.load %arg7[%c0_13, %c0_14] : memref<80x128xf32, #tpu.memory_space<vmem>>, vector<80x128xf32>
    %12 = arith.addf %11, %10 : vector<80x128xf32>
    %c0_15 = arith.constant 0 : index
    %c0_16 = arith.constant 0 : index
    %13 = vector.load %arg7[%c0_15, %c0_16] : memref<80x128xf32, #tpu.memory_space<vmem>>, vector<80x128xf32>
    tpu.vector_store %arg7[%c0_15, %c0_16], %12 {strides = array<i32>} : memref<80x128xf32, #tpu.memory_space<vmem>>, vector<80x128xf32>,
    %c0_17 = arith.constant 0 : index
    %c2 = arith.constant 2 : index
    %c0_18 = arith.constant 0 : index
    %14 = vector.load %arg2[%c0_17, %c2, %c0_18] : memref<1x102x128xbf16, #tpu.memory_space<vmem>>, vector<1x80x128xbf16>
    %15 = vector.shape_cast %14 : vector<1x80x128xbf16> to vector<80x128xbf16>
    %c2_19 = arith.constant 2 : index
    %c0_20 = arith.constant 0 : index
    %c0_21 = arith.constant 0 : index
    %16 = vector.load %arg3[%c2_19, %c0_20, %c0_21] : memref<9x128x128xbf16, #tpu.memory_space<vmem>>, vector<1x128x128xbf16>
    %17 = vector.shape_cast %16 : vector<1x128x128xbf16> to vector<128x128xbf16>
    %cst_22 = arith.constant dense<0.000000e+00> : vector<80x128xf32>
    %18 = tpu.matmul %15, %17, %cst_22 {dimension_numbers = #tpu.dot_dimension_numbers<[1], [0], [0], [1], [0, 0, 1, 1], [], []>} : vector<80x128xbf16>, vector<128x128xbf16>, vector<80x128xf32> -> vector<80x128xf32>
    %c0_23 = arith.constant 0 : index
    %c0_24 = arith.constant 0 : index
    %19 = vector.load %arg7[%c0_23, %c0_24] : memref<80x128xf32, #tpu.memory_space<vmem>>, vector<80x128xf32>
    %20 = arith.addf %19, %18 : vector<80x128xf32>
    %c0_25 = arith.constant 0 : index
    %c0_26 = arith.constant 0 : index
    %21 = vector.load %arg7[%c0_25, %c0_26] : memref<80x128xf32, #tpu.memory_space<vmem>>, vector<80x128xf32>
    tpu.vector_store %arg7[%c0_25, %c0_26], %20 {strides = array<i32>} : memref<80x128xf32, #tpu.memory_space<vmem>>, vector<80x128xf32>,
    %c0_27 = arith.constant 0 : index
    %c10 = arith.constant 10 : index
    %c0_28 = arith.constant 0 : index
    %22 = vector.load %arg2[%c0_27, %c10, %c0_28] : memref<1x102x128xbf16, #tpu.memory_space<vmem>>, vector<1x80x128xbf16>
    %23 = vector.shape_cast %22 : vector<1x80x128xbf16> to vector<80x128xbf16>
    %c3 = arith.constant 3 : index
    %c0_29 = arith.constant 0 : index
    %c0_30 = arith.constant 0 : index
    %24 = vector.load %arg3[%c3, %c0_29, %c0_30] : memref<9x128x128xbf16, #tpu.memory_space<vmem>>, vector<1x128x128xbf16>
    %25 = vector.shape_cast %24 : vector<1x128x128xbf16> to vector<128x128xbf16>
    %cst_31 = arith.constant dense<0.000000e+00> : vector<80x128xf32>
    %26 = tpu.matmul %23, %25, %cst_31 {dimension_numbers = #tpu.dot_dimension_numbers<[1], [0], [0], [1], [0, 0, 1, 1], [], []>} : vector<80x128xbf16>, vector<128x128xbf16>, vector<80x128xf32> -> vector<80x128xf32>
    %c0_32 = arith.constant 0 : index
    %c0_33 = arith.constant 0 : index
    %27 = vector.load %arg7[%c0_32, %c0_33] : memref<80x128xf32, #tpu.memory_space<vmem>>, vector<80x128xf32>
    %28 = arith.addf %27, %26 : vector<80x128xf32>
    %c0_34 = arith.constant 0 : index
    %c0_35 = arith.constant 0 : index
    %29 = vector.load %arg7[%c0_34, %c0_35] : memref<80x128xf32, #tpu.memory_space<vmem>>, vector<80x128xf32>
    tpu.vector_store %arg7[%c0_34, %c0_35], %28 {strides = array<i32>} : memref<80x128xf32, #tpu.memory_space<vmem>>, vector<80x128xf32>,
    %c0_36 = arith.constant 0 : index
    %c11 = arith.constant 11 : index
    %c0_37 = arith.constant 0 : index
    %30 = vector.load %arg2[%c0_36, %c11, %c0_37] : memref<1x102x128xbf16, #tpu.memory_space<vmem>>, vector<1x80x128xbf16>
    %31 = vector.shape_cast %30 : vector<1x80x128xbf16> to vector<80x128xbf16>
    %c4 = arith.constant 4 : index
    %c0_38 = arith.constant 0 : index
    %c0_39 = arith.constant 0 : index
    %32 = vector.load %arg3[%c4, %c0_38, %c0_39] : memref<9x128x128xbf16, #tpu.memory_space<vmem>>, vector<1x128x128xbf16>
    %33 = vector.shape_cast %32 : vector<1x128x128xbf16> to vector<128x128xbf16>
    %cst_40 = arith.constant dense<0.000000e+00> : vector<80x128xf32>
    %34 = tpu.matmul %31, %33, %cst_40 {dimension_numbers = #tpu.dot_dimension_numbers<[1], [0], [0], [1], [0, 0, 1, 1], [], []>} : vector<80x128xbf16>, vector<128x128xbf16>, vector<80x128xf32> -> vector<80x128xf32>
    %c0_41 = arith.constant 0 : index
    %c0_42 = arith.constant 0 : index
    %35 = vector.load %arg7[%c0_41, %c0_42] : memref<80x128xf32, #tpu.memory_space<vmem>>, vector<80x128xf32>
    %36 = arith.addf %35, %34 : vector<80x128xf32>
    %c0_43 = arith.constant 0 : index
    %c0_44 = arith.constant 0 : index
    %37 = vector.load %arg7[%c0_43, %c0_44] : memref<80x128xf32, #tpu.memory_space<vmem>>, vector<80x128xf32>
    tpu.vector_store %arg7[%c0_43, %c0_44], %36 {strides = array<i32>} : memref<80x128xf32, #tpu.memory_space<vmem>>, vector<80x128xf32>,
    %c0_45 = arith.constant 0 : index
    %c12 = arith.constant 12 : index
    %c0_46 = arith.constant 0 : index
    %38 = vector.load %arg2[%c0_45, %c12, %c0_46] : memref<1x102x128xbf16, #tpu.memory_space<vmem>>, vector<1x80x128xbf16>
    %39 = vector.shape_cast %38 : vector<1x80x128xbf16> to vector<80x128xbf16>
    %c5 = arith.constant 5 : index
    %c0_47 = arith.constant 0 : index
    %c0_48 = arith.constant 0 : index
    %40 = vector.load %arg3[%c5, %c0_47, %c0_48] : memref<9x128x128xbf16, #tpu.memory_space<vmem>>, vector<1x128x128xbf16>
    %41 = vector.shape_cast %40 : vector<1x128x128xbf16> to vector<128x128xbf16>
    %cst_49 = arith.constant dense<0.000000e+00> : vector<80x128xf32>
    %42 = tpu.matmul %39, %41, %cst_49 {dimension_numbers = #tpu.dot_dimension_numbers<[1], [0], [0], [1], [0, 0, 1, 1], [], []>} : vector<80x128xbf16>, vector<128x128xbf16>, vector<80x128xf32> -> vector<80x128xf32>
    %c0_50 = arith.constant 0 : index
    %c0_51 = arith.constant 0 : index
    %43 = vector.load %arg7[%c0_50, %c0_51] : memref<80x128xf32, #tpu.memory_space<vmem>>, vector<80x128xf32>
    %44 = arith.addf %43, %42 : vector<80x128xf32>
    %c0_52 = arith.constant 0 : index
    %c0_53 = arith.constant 0 : index
    %45 = vector.load %arg7[%c0_52, %c0_53] : memref<80x128xf32, #tpu.memory_space<vmem>>, vector<80x128xf32>
    tpu.vector_store %arg7[%c0_52, %c0_53], %44 {strides = array<i32>} : memref<80x128xf32, #tpu.memory_space<vmem>>, vector<80x128xf32>,
    %c0_54 = arith.constant 0 : index
    %c20 = arith.constant 20 : index
    %c0_55 = arith.constant 0 : index
    %46 = vector.load %arg2[%c0_54, %c20, %c0_55] : memref<1x102x128xbf16, #tpu.memory_space<vmem>>, vector<1x80x128xbf16>
    %47 = vector.shape_cast %46 : vector<1x80x128xbf16> to vector<80x128xbf16>
    %c6 = arith.constant 6 : index
    %c0_56 = arith.constant 0 : index
    %c0_57 = arith.constant 0 : index
    %48 = vector.load %arg3[%c6, %c0_56, %c0_57] : memref<9x128x128xbf16, #tpu.memory_space<vmem>>, vector<1x128x128xbf16>
    %49 = vector.shape_cast %48 : vector<1x128x128xbf16> to vector<128x128xbf16>
    %cst_58 = arith.constant dense<0.000000e+00> : vector<80x128xf32>
    %50 = tpu.matmul %47, %49, %cst_58 {dimension_numbers = #tpu.dot_dimension_numbers<[1], [0], [0], [1], [0, 0, 1, 1], [], []>} : vector<80x128xbf16>, vector<128x128xbf16>, vector<80x128xf32> -> vector<80x128xf32>
    %c0_59 = arith.constant 0 : index
    %c0_60 = arith.constant 0 : index
    %51 = vector.load %arg7[%c0_59, %c0_60] : memref<80x128xf32, #tpu.memory_space<vmem>>, vector<80x128xf32>
    %52 = arith.addf %51, %50 : vector<80x128xf32>
    %c0_61 = arith.constant 0 : index
    %c0_62 = arith.constant 0 : index
    %53 = vector.load %arg7[%c0_61, %c0_62] : memref<80x128xf32, #tpu.memory_space<vmem>>, vector<80x128xf32>
    tpu.vector_store %arg7[%c0_61, %c0_62], %52 {strides = array<i32>} : memref<80x128xf32, #tpu.memory_space<vmem>>, vector<80x128xf32>,
    %c0_63 = arith.constant 0 : index
    %c21 = arith.constant 21 : index
    %c0_64 = arith.constant 0 : index
    %54 = vector.load %arg2[%c0_63, %c21, %c0_64] : memref<1x102x128xbf16, #tpu.memory_space<vmem>>, vector<1x80x128xbf16>
    %55 = vector.shape_cast %54 : vector<1x80x128xbf16> to vector<80x128xbf16>
    %c7 = arith.constant 7 : index
    %c0_65 = arith.constant 0 : index
    %c0_66 = arith.constant 0 : index
    %56 = vector.load %arg3[%c7, %c0_65, %c0_66] : memref<9x128x128xbf16, #tpu.memory_space<vmem>>, vector<1x128x128xbf16>
    %57 = vector.shape_cast %56 : vector<1x128x128xbf16> to vector<128x128xbf16>
    %cst_67 = arith.constant dense<0.000000e+00> : vector<80x128xf32>
    %58 = tpu.matmul %55, %57, %cst_67 {dimension_numbers = #tpu.dot_dimension_numbers<[1], [0], [0], [1], [0, 0, 1, 1], [], []>} : vector<80x128xbf16>, vector<128x128xbf16>, vector<80x128xf32> -> vector<80x128xf32>
    %c0_68 = arith.constant 0 : index
    %c0_69 = arith.constant 0 : index
    %59 = vector.load %arg7[%c0_68, %c0_69] : memref<80x128xf32, #tpu.memory_space<vmem>>, vector<80x128xf32>
    %60 = arith.addf %59, %58 : vector<80x128xf32>
    %c0_70 = arith.constant 0 : index
    %c0_71 = arith.constant 0 : index
    %61 = vector.load %arg7[%c0_70, %c0_71] : memref<80x128xf32, #tpu.memory_space<vmem>>, vector<80x128xf32>
    tpu.vector_store %arg7[%c0_70, %c0_71], %60 {strides = array<i32>} : memref<80x128xf32, #tpu.memory_space<vmem>>, vector<80x128xf32>,
    %c0_72 = arith.constant 0 : index
    %c22 = arith.constant 22 : index
    %c0_73 = arith.constant 0 : index
    %62 = vector.load %arg2[%c0_72, %c22, %c0_73] : memref<1x102x128xbf16, #tpu.memory_space<vmem>>, vector<1x80x128xbf16>
    %63 = vector.shape_cast %62 : vector<1x80x128xbf16> to vector<80x128xbf16>
    %c8 = arith.constant 8 : index
    %c0_74 = arith.constant 0 : index
    %c0_75 = arith.constant 0 : index
    %64 = vector.load %arg3[%c8, %c0_74, %c0_75] : memref<9x128x128xbf16, #tpu.memory_space<vmem>>, vector<1x128x128xbf16>
    %65 = vector.shape_cast %64 : vector<1x128x128xbf16> to vector<128x128xbf16>
    %cst_76 = arith.constant dense<0.000000e+00> : vector<80x128xf32>
    %66 = tpu.matmul %63, %65, %cst_76 {dimension_numbers = #tpu.dot_dimension_numbers<[1], [0], [0], [1], [0, 0, 1, 1], [], []>} : vector<80x128xbf16>, vector<128x128xbf16>, vector<80x128xf32> -> vector<80x128xf32>
    %c0_77 = arith.constant 0 : index
    %c0_78 = arith.constant 0 : index
    %67 = vector.load %arg7[%c0_77, %c0_78] : memref<80x128xf32, #tpu.memory_space<vmem>>, vector<80x128xf32>
    %68 = arith.addf %67, %66 : vector<80x128xf32>
    %c0_79 = arith.constant 0 : index
    %c0_80 = arith.constant 0 : index
    %69 = vector.load %arg7[%c0_79, %c0_80] : memref<80x128xf32, #tpu.memory_space<vmem>>, vector<80x128xf32>
    tpu.vector_store %arg7[%c0_79, %c0_80], %68 {strides = array<i32>} : memref<80x128xf32, #tpu.memory_space<vmem>>, vector<80x128xf32>,
    %c0_81 = arith.constant 0 : index
    %c0_82 = arith.constant 0 : index
    %70 = vector.load %arg7[%c0_81, %c0_82] : memref<80x128xf32, #tpu.memory_space<vmem>>, vector<80x128xf32>
    %c0_83 = arith.constant 0 : index
    %c0_84 = arith.constant 0 : index
    %71 = vector.load %arg4[%c0_83, %c0_84] : memref<1x128xf32, #tpu.memory_space<vmem>>, vector<1x128xf32>
    %72 = vector.broadcast %71 : vector<1x128xf32> to vector<80x128xf32>
    %73 = arith.mulf %70, %72 : vector<80x128xf32>
    %c0_85 = arith.constant 0 : index
    %c0_86 = arith.constant 0 : index
    %74 = vector.load %arg5[%c0_85, %c0_86] : memref<1x128xf32, #tpu.memory_space<vmem>>, vector<1x128xf32>
    %75 = vector.broadcast %74 : vector<1x128xf32> to vector<80x128xf32>
    %76 = arith.addf %73, %75 : vector<80x128xf32>
    %cst_87 = arith.constant 0.000000e+00 : f32
    %77 = vector.broadcast %cst_87 : f32 to vector<80x128xf32>
    %78 = arith.maximumf %76, %77 : vector<80x128xf32>
    %79 = arith.truncf %78 : vector<80x128xf32> to vector<80x128xbf16>
    %c0_88 = arith.constant 0 : index
    %c0_89 = arith.constant 0 : index
    %c0_90 = arith.constant 0 : index
    %80 = vector.load %arg6[%c0_88, %c0_89, %c0_90] : memref<1x80x128xbf16, #tpu.memory_space<vmem>>, vector<1x80x128xbf16>
    %81 = vector.shape_cast %80 : vector<1x80x128xbf16> to vector<80x128xbf16>
    %82 = vector.shape_cast %79 : vector<80x128xbf16> to vector<1x80x128xbf16>
    tpu.vector_store %arg6[%c0_88, %c0_89, %c0_90], %82 {strides = array<i32>} : memref<1x80x128xbf16, #tpu.memory_space<vmem>>, vector<1x80x128xbf16>,
    return
  }
  func.func @transform_0(%arg0: i32, %arg1: i32) -> (i32, i32, i32) {
    %c0_i32 = arith.constant 0 : i32
    %c0_i32_0 = arith.constant 0 : i32
    %c0_i32_1 = arith.constant 0 : i32
    return %arg0, %c0_i32, %c0_i32_0 : i32, i32, i32
  }
  func.func @transform_1(%arg0: i32, %arg1: i32) -> (i32, i32, i32) {
    %c0_i32 = arith.constant 0 : i32
    %c0_i32_0 = arith.constant 0 : i32
    %c0_i32_1 = arith.constant 0 : i32
    return %c0_i32, %c0_i32_0, %arg1 : i32, i32, i32
  }
  func.func @transform_2(%arg0: i32, %arg1: i32) -> (i32, i32) {
    %c0_i32 = arith.constant 0 : i32
    %c0_i32_0 = arith.constant 0 : i32
    return %c0_i32, %arg1 : i32, i32
  }
  func.func @transform_3(%arg0: i32, %arg1: i32) -> (i32, i32) {
    %c0_i32 = arith.constant 0 : i32
    %c0_i32_0 = arith.constant 0 : i32
    return %c0_i32, %arg1 : i32, i32
  }
  func.func @transform_4(%arg0: i32, %arg1: i32) -> (i32, i32, i32) {
    %c0_i32 = arith.constant 0 : i32
    %c0_i32_0 = arith.constant 0 : i32
    return %arg0, %c0_i32, %arg1 : i32, i32, i32
  }
}

module attributes {stable_mosaic.version = 11 : i64} {
  func.func @_mm_bn_kernel(%arg0: i32, %arg1: i32, %arg2: i32, %arg3: memref<128x128xbf16, #tpu.memory_space<vmem>>, %arg4: memref<128x256xbf16, #tpu.memory_space<vmem>>, %arg5: memref<1x256xf32, #tpu.memory_space<vmem>>, %arg6: memref<1x256xf32, #tpu.memory_space<vmem>>, %arg7: memref<128x256xbf16, #tpu.memory_space<vmem>>, %arg8: memref<128x256xf32, #tpu.memory_space<vmem>>) attributes {dimension_semantics = [#tpu.dimension_semantics<parallel>, #tpu.dimension_semantics<parallel>, #tpu.dimension_semantics<arbitrary>], iteration_bounds = array<i64: 1, 1, 1>, scalar_prefetch = 0 : i64, scratch_operands = 1 : i64, tpu.core_type = #tpu.core_type<tc>, window_params = [{transform_indices = @transform_0, window_bounds = array<i64: 128, 128>}, {transform_indices = @transform_1, window_bounds = array<i64: 128, 256>}, {transform_indices = @transform_2, window_bounds = array<i64: 1, 256>}, {transform_indices = @transform_3, window_bounds = array<i64: 1, 256>}, {transform_indices = @transform_4, window_bounds = array<i64: 128, 256>}]} {
    %c0_i32 = arith.constant 0 : i32
    %0 = arith.cmpi eq, %arg2, %c0_i32 : i32
    %1 = arith.extui %0 : i1 to i32
    %c0_i32_0 = arith.constant 0 : i32
    %2 = arith.cmpi ne, %1, %c0_i32_0 : i32
    scf.if %2 {
      %cst_10 = arith.constant 0.000000e+00 : f32
      %12 = vector.broadcast %cst_10 : f32 to vector<128x256xf32>
      %c0_11 = arith.constant 0 : index
      %c0_12 = arith.constant 0 : index
      %13 = vector.load %arg8[%c0_11, %c0_12] : memref<128x256xf32, #tpu.memory_space<vmem>>, vector<128x256xf32>
      tpu.vector_store %arg8[%c0_11, %c0_12], %12 {strides = array<i32>} : memref<128x256xf32, #tpu.memory_space<vmem>>, vector<128x256xf32>,
    } else {
    }
    %c0 = arith.constant 0 : index
    %c0_1 = arith.constant 0 : index
    %3 = vector.load %arg8[%c0, %c0_1] : memref<128x256xf32, #tpu.memory_space<vmem>>, vector<128x256xf32>
    %c0_2 = arith.constant 0 : index
    %c0_3 = arith.constant 0 : index
    %4 = vector.load %arg3[%c0_2, %c0_3] : memref<128x128xbf16, #tpu.memory_space<vmem>>, vector<128x128xbf16>
    %c0_4 = arith.constant 0 : index
    %c0_5 = arith.constant 0 : index
    %5 = vector.load %arg4[%c0_4, %c0_5] : memref<128x256xbf16, #tpu.memory_space<vmem>>, vector<128x256xbf16>
    %cst = arith.constant dense<0.000000e+00> : vector<128x256xf32>
    %6 = tpu.matmul %4, %5, %cst {dimension_numbers = #tpu.dot_dimension_numbers<[1], [0], [0], [1], [0, 0, 1, 1], [], []>} : vector<128x128xbf16>, vector<128x256xbf16>, vector<128x256xf32> -> vector<128x256xf32>
    %7 = arith.addf %3, %6 : vector<128x256xf32>
    %c0_6 = arith.constant 0 : index
    %c0_7 = arith.constant 0 : index
    %8 = vector.load %arg8[%c0_6, %c0_7] : memref<128x256xf32, #tpu.memory_space<vmem>>, vector<128x256xf32>
    tpu.vector_store %arg8[%c0_6, %c0_7], %7 {strides = array<i32>} : memref<128x256xf32, #tpu.memory_space<vmem>>, vector<128x256xf32>,
    %c0_i32_8 = arith.constant 0 : i32
    %9 = arith.cmpi eq, %arg2, %c0_i32_8 : i32
    %10 = arith.extui %9 : i1 to i32
    %c0_i32_9 = arith.constant 0 : i32
    %11 = arith.cmpi ne, %10, %c0_i32_9 : i32
    scf.if %11 {
      %c0_10 = arith.constant 0 : index
      %c0_11 = arith.constant 0 : index
      %12 = vector.load %arg8[%c0_10, %c0_11] : memref<128x256xf32, #tpu.memory_space<vmem>>, vector<128x256xf32>
      %c0_12 = arith.constant 0 : index
      %c0_13 = arith.constant 0 : index
      %13 = vector.load %arg5[%c0_12, %c0_13] : memref<1x256xf32, #tpu.memory_space<vmem>>, vector<1x256xf32>
      %14 = vector.broadcast %13 : vector<1x256xf32> to vector<128x256xf32>
      %15 = arith.mulf %12, %14 : vector<128x256xf32>
      %c0_14 = arith.constant 0 : index
      %c0_15 = arith.constant 0 : index
      %16 = vector.load %arg6[%c0_14, %c0_15] : memref<1x256xf32, #tpu.memory_space<vmem>>, vector<1x256xf32>
      %17 = vector.broadcast %16 : vector<1x256xf32> to vector<128x256xf32>
      %18 = arith.addf %15, %17 : vector<128x256xf32>
      %19 = arith.truncf %18 : vector<128x256xf32> to vector<128x256xbf16>
      %c0_16 = arith.constant 0 : index
      %c0_17 = arith.constant 0 : index
      %20 = vector.load %arg7[%c0_16, %c0_17] : memref<128x256xbf16, #tpu.memory_space<vmem>>, vector<128x256xbf16>
      tpu.vector_store %arg7[%c0_16, %c0_17], %19 {strides = array<i32>} : memref<128x256xbf16, #tpu.memory_space<vmem>>, vector<128x256xbf16>,
    } else {
    }
    return
  }
  func.func @transform_0(%arg0: i32, %arg1: i32, %arg2: i32) -> (i32, i32) {
    %c0_i32 = arith.constant 0 : i32
    return %arg0, %arg2 : i32, i32
  }
  func.func @transform_1(%arg0: i32, %arg1: i32, %arg2: i32) -> (i32, i32) {
    %c0_i32 = arith.constant 0 : i32
    return %arg2, %arg1 : i32, i32
  }
  func.func @transform_2(%arg0: i32, %arg1: i32, %arg2: i32) -> (i32, i32) {
    %c0_i32 = arith.constant 0 : i32
    %c0_i32_0 = arith.constant 0 : i32
    return %c0_i32, %arg1 : i32, i32
  }
  func.func @transform_3(%arg0: i32, %arg1: i32, %arg2: i32) -> (i32, i32) {
    %c0_i32 = arith.constant 0 : i32
    %c0_i32_0 = arith.constant 0 : i32
    return %c0_i32, %arg1 : i32, i32
  }
  func.func @transform_4(%arg0: i32, %arg1: i32, %arg2: i32) -> (i32, i32) {
    %c0_i32 = arith.constant 0 : i32
    return %arg0, %arg1 : i32, i32
  }
}

module attributes {stable_mosaic.version = 11 : i64} {
  func.func @_mm_bn_res_kernel(%arg0: i32, %arg1: i32, %arg2: i32, %arg3: memref<128x128xbf16, #tpu.memory_space<vmem>>, %arg4: memref<128x256xbf16, #tpu.memory_space<vmem>>, %arg5: memref<1x256xf32, #tpu.memory_space<vmem>>, %arg6: memref<1x256xf32, #tpu.memory_space<vmem>>, %arg7: memref<128x256xbf16, #tpu.memory_space<vmem>>, %arg8: memref<128x256xf32, #tpu.memory_space<vmem>>, %arg9: memref<128x256xf32, #tpu.memory_space<vmem>>) attributes {dimension_semantics = [#tpu.dimension_semantics<parallel>, #tpu.dimension_semantics<parallel>, #tpu.dimension_semantics<arbitrary>], iteration_bounds = array<i64: 1, 1, 1>, scalar_prefetch = 0 : i64, scratch_operands = 1 : i64, tpu.core_type = #tpu.core_type<tc>, window_params = [{transform_indices = @transform_0, window_bounds = array<i64: 128, 128>}, {transform_indices = @transform_1, window_bounds = array<i64: 128, 256>}, {transform_indices = @transform_2, window_bounds = array<i64: 1, 256>}, {transform_indices = @transform_3, window_bounds = array<i64: 1, 256>}, {transform_indices = @transform_4, window_bounds = array<i64: 128, 256>}, {transform_indices = @transform_5, window_bounds = array<i64: 128, 256>}]} {
    %c0_i32 = arith.constant 0 : i32
    %0 = arith.cmpi eq, %arg2, %c0_i32 : i32
    %1 = arith.extui %0 : i1 to i32
    %c0_i32_0 = arith.constant 0 : i32
    %2 = arith.cmpi ne, %1, %c0_i32_0 : i32
    scf.if %2 {
      %cst_10 = arith.constant 0.000000e+00 : f32
      %12 = vector.broadcast %cst_10 : f32 to vector<128x256xf32>
      %c0_11 = arith.constant 0 : index
      %c0_12 = arith.constant 0 : index
      %13 = vector.load %arg9[%c0_11, %c0_12] : memref<128x256xf32, #tpu.memory_space<vmem>>, vector<128x256xf32>
      tpu.vector_store %arg9[%c0_11, %c0_12], %12 {strides = array<i32>} : memref<128x256xf32, #tpu.memory_space<vmem>>, vector<128x256xf32>,
    } else {
    }
    %c0 = arith.constant 0 : index
    %c0_1 = arith.constant 0 : index
    %3 = vector.load %arg9[%c0, %c0_1] : memref<128x256xf32, #tpu.memory_space<vmem>>, vector<128x256xf32>
    %c0_2 = arith.constant 0 : index
    %c0_3 = arith.constant 0 : index
    %4 = vector.load %arg3[%c0_2, %c0_3] : memref<128x128xbf16, #tpu.memory_space<vmem>>, vector<128x128xbf16>
    %c0_4 = arith.constant 0 : index
    %c0_5 = arith.constant 0 : index
    %5 = vector.load %arg4[%c0_4, %c0_5] : memref<128x256xbf16, #tpu.memory_space<vmem>>, vector<128x256xbf16>
    %cst = arith.constant dense<0.000000e+00> : vector<128x256xf32>
    %6 = tpu.matmul %4, %5, %cst {dimension_numbers = #tpu.dot_dimension_numbers<[1], [0], [0], [1], [0, 0, 1, 1], [], []>} : vector<128x128xbf16>, vector<128x256xbf16>, vector<128x256xf32> -> vector<128x256xf32>
    %7 = arith.addf %3, %6 : vector<128x256xf32>
    %c0_6 = arith.constant 0 : index
    %c0_7 = arith.constant 0 : index
    %8 = vector.load %arg9[%c0_6, %c0_7] : memref<128x256xf32, #tpu.memory_space<vmem>>, vector<128x256xf32>
    tpu.vector_store %arg9[%c0_6, %c0_7], %7 {strides = array<i32>} : memref<128x256xf32, #tpu.memory_space<vmem>>, vector<128x256xf32>,
    %c0_i32_8 = arith.constant 0 : i32
    %9 = arith.cmpi eq, %arg2, %c0_i32_8 : i32
    %10 = arith.extui %9 : i1 to i32
    %c0_i32_9 = arith.constant 0 : i32
    %11 = arith.cmpi ne, %10, %c0_i32_9 : i32
    scf.if %11 {
      %c0_10 = arith.constant 0 : index
      %c0_11 = arith.constant 0 : index
      %12 = vector.load %arg9[%c0_10, %c0_11] : memref<128x256xf32, #tpu.memory_space<vmem>>, vector<128x256xf32>
      %c0_12 = arith.constant 0 : index
      %c0_13 = arith.constant 0 : index
      %13 = vector.load %arg5[%c0_12, %c0_13] : memref<1x256xf32, #tpu.memory_space<vmem>>, vector<1x256xf32>
      %14 = vector.broadcast %13 : vector<1x256xf32> to vector<128x256xf32>
      %15 = arith.mulf %12, %14 : vector<128x256xf32>
      %c0_14 = arith.constant 0 : index
      %c0_15 = arith.constant 0 : index
      %16 = vector.load %arg6[%c0_14, %c0_15] : memref<1x256xf32, #tpu.memory_space<vmem>>, vector<1x256xf32>
      %17 = vector.broadcast %16 : vector<1x256xf32> to vector<128x256xf32>
      %18 = arith.addf %15, %17 : vector<128x256xf32>
      %c0_16 = arith.constant 0 : index
      %c0_17 = arith.constant 0 : index
      %19 = vector.load %arg7[%c0_16, %c0_17] : memref<128x256xbf16, #tpu.memory_space<vmem>>, vector<128x256xbf16>
      %20 = arith.extf %19 : vector<128x256xbf16> to vector<128x256xf32>
      %21 = arith.addf %18, %20 : vector<128x256xf32>
      %cst_18 = arith.constant 0.000000e+00 : f32
      %22 = vector.broadcast %cst_18 : f32 to vector<128x256xf32>
      %23 = arith.maximumf %21, %22 : vector<128x256xf32>
      %c0_19 = arith.constant 0 : index
      %c0_20 = arith.constant 0 : index
      %24 = vector.load %arg8[%c0_19, %c0_20] : memref<128x256xf32, #tpu.memory_space<vmem>>, vector<128x256xf32>
      tpu.vector_store %arg8[%c0_19, %c0_20], %23 {strides = array<i32>} : memref<128x256xf32, #tpu.memory_space<vmem>>, vector<128x256xf32>,
    } else {
    }
    return
  }
  func.func @transform_0(%arg0: i32, %arg1: i32, %arg2: i32) -> (i32, i32) {
    %c0_i32 = arith.constant 0 : i32
    return %arg0, %arg2 : i32, i32
  }
  func.func @transform_1(%arg0: i32, %arg1: i32, %arg2: i32) -> (i32, i32) {
    %c0_i32 = arith.constant 0 : i32
    return %arg2, %arg1 : i32, i32
  }
  func.func @transform_2(%arg0: i32, %arg1: i32, %arg2: i32) -> (i32, i32) {
    %c0_i32 = arith.constant 0 : i32
    %c0_i32_0 = arith.constant 0 : i32
    return %c0_i32, %arg1 : i32, i32
  }
  func.func @transform_3(%arg0: i32, %arg1: i32, %arg2: i32) -> (i32, i32) {
    %c0_i32 = arith.constant 0 : i32
    %c0_i32_0 = arith.constant 0 : i32
    return %c0_i32, %arg1 : i32, i32
  }
  func.func @transform_4(%arg0: i32, %arg1: i32, %arg2: i32) -> (i32, i32) {
    %c0_i32 = arith.constant 0 : i32
    return %arg0, %arg1 : i32, i32
  }
  func.func @transform_5(%arg0: i32, %arg1: i32, %arg2: i32) -> (i32, i32) {
    %c0_i32 = arith.constant 0 : i32
    return %arg0, %arg1 : i32, i32
  }
}

</mosaic_0001>

<bundles_post_ra>
// kernel: bottleneck_forward.4
= control target key start
LH: loop header
LB: loop body
LE: loop exit
PB: predicated region body
PF: predicated region fallthrough
CT: control target
= control target key end

     0   :  { %s665_s1 = inlined_call_operand.vmem [shape: bf16[128,128], index: 1, kind: input, shape index: {}]   ;;  %s666_s2 = inlined_call_operand.vmem [shape: f32[1,128], index: 2, kind: input, shape index: {}]   ;;  %s667_s3 = inlined_call_operand.vmem [shape: f32[1,128], index: 3, kind: input, shape index: {}]   ;;  %s668_s0 = inlined_call_operand.vmem [shape: bf16[128,128], index: 0, kind: input, shape index: {}]   ;;  %s669_s4 = inlined_call_operand.vmem [shape: bf16[128,128], index: 4, kind: output, shape index: {}]  }
   0x1   :  { %v452_v0 = vld [vmem:[%s665_s1 + $0x38] sm:$0xff]  ;;  %v451_v1 = vld [vmem:[%s665_s1 + $0x30] sm:$0xff]  ;;  %v450_v2 = vld [vmem:[%s665_s1 + $0x28] sm:$0xff] }
   0x2   :  { %181 = vmatpush.bf16.msra.mxu0 %v452_v0  ;;  %500 = vmatpush.bf16.msra.mxu1 %v452_v0  ;;  %v449_v3 = vld [vmem:[%s665_s1 + $0x20] sm:$0xff]  ;;  %v448_v4 = vld [vmem:[%s665_s1 + $0x18] sm:$0xff]  ;;  %v447_v5 = vld [vmem:[%s665_s1 + $0x10] sm:$0xff] }
   0x3   :  { %501 = vmatpush.bf16.msra.mxu2 %v452_v0  ;;  %502 = vmatpush.bf16.msra.mxu3 %v452_v0  ;;  %v446_v6 = vld [vmem:[%s665_s1 + $0x8] sm:$0xff]  ;;  %v445_v7 = vld [vmem:[%s665_s1] sm:$0xff]  ;;  %v439_v9 = vld [vmem:[%s668_s0 + $0x10] sm:$0xff] }
   0x4   :  { %v437_v8 = vld [vmem:[%s668_s0] sm:$0xff]  ;;  %v443_v11 = vld [vmem:[%s668_s0 + $0x30] sm:$0xff]  ;;  %v438_v12 = vld [vmem:[%s668_s0 + $0x8] sm:$0xff] }
   0x5   :  { %v441_v10 = vld [vmem:[%s668_s0 + $0x20] sm:$0xff]  ;;  %v440_v13 = vld [vmem:[%s668_s0 + $0x18] sm:$0xff]  ;;  %v442_v14 = vld [vmem:[%s668_s0 + $0x28] sm:$0xff] }
   0x6   :  { %182 = vmatpush.bf16.msra.mxu0 %v451_v1  ;;  %503 = vmatpush.bf16.msra.mxu1 %v451_v1  ;;  %v444_v15 = vld [vmem:[%s668_s0 + $0x38] sm:$0xff]  ;;  %v602_v18 = vld [vmem:[%s666_s2] ss:$0 sm:$0xff] }
   0x7   :  { %504 = vmatpush.bf16.msra.mxu2 %v451_v1  ;;  %505 = vmatpush.bf16.msra.mxu3 %v451_v1  ;;  %v608_v20 = vld [vmem:[%s667_s3] ss:$0 sm:$0xff] }
   0xa   :  { %183 = vmatpush.bf16.msra.mxu0 %v450_v2  ;;  %506 = vmatpush.bf16.msra.mxu1 %v450_v2 }
   0xb   :  { %507 = vmatpush.bf16.msra.mxu2 %v450_v2  ;;  %508 = vmatpush.bf16.msra.mxu3 %v450_v2 }
   0xe   :  { %184 = vmatpush.bf16.msra.mxu0 %v449_v3  ;;  %509 = vmatpush.bf16.msra.mxu1 %v449_v3 }
   0xf   :  { %510 = vmatpush.bf16.msra.mxu2 %v449_v3  ;;  %511 = vmatpush.bf16.msra.mxu3 %v449_v3 }
  0x12   :  { %185 = vmatpush.bf16.msra.mxu0 %v448_v4  ;;  %512 = vmatpush.bf16.msra.mxu1 %v448_v4 }
  0x13   :  { %513 = vmatpush.bf16.msra.mxu2 %v448_v4  ;;  %514 = vmatpush.bf16.msra.mxu3 %v448_v4 }
  0x16   :  { %186 = vmatpush.bf16.msra.mxu0 %v447_v5  ;;  %515 = vmatpush.bf16.msra.mxu1 %v447_v5 }
  0x17   :  { %516 = vmatpush.bf16.msra.mxu2 %v447_v5  ;;  %517 = vmatpush.bf16.msra.mxu3 %v447_v5 }
  0x1a   :  { %187 = vmatpush.bf16.msra.mxu0 %v446_v6  ;;  %518 = vmatpush.bf16.msra.mxu1 %v446_v6 }
  0x1b   :  { %519 = vmatpush.bf16.msra.mxu2 %v446_v6  ;;  %520 = vmatpush.bf16.msra.mxu3 %v446_v6 }
  0x1e   :  { %188 = vmatpush.bf16.msra.mxu0 %v445_v7  ;;  %521 = vmatpush.bf16.msra.mxu1 %v445_v7 }
  0x1f   :  { %522 = vmatpush.bf16.msra.mxu2 %v445_v7  ;;  %523 = vmatpush.bf16.msra.mxu3 %v445_v7 }
  0x21   :  { %189 = vmatmul.bf16.vlgmr.msra.gmra.mxu0 %v437_v8  ;;  %199 = vmatmul.bf16.vlgmr.msra.gmra.mxu1 %v439_v9 }
  0x22   :  { %209 = vmatmul.bf16.vlgmr.msra.gmra.mxu2 %v441_v10  ;;  %219 = vmatmul.bf16.vlgmr.msra.gmra.mxu3 %v443_v11 }
  0x31   :  { %194 = vmatmul.bf16.gmra.mxu0 %v438_v12  ;;  %204 = vmatmul.bf16.gmra.mxu1 %v440_v13 }
  0x32   :  { %214 = vmatmul.bf16.gmra.mxu2 %v442_v14  ;;  %224 = vmatmul.bf16.gmra.mxu3 %v444_v15 }
  0x9e   :  { %v190_v16 = vpop.f32.mrf.mxu0  ;;  %v200_v17 = vpop.f32.mrf.mxu1 }
  0x9f   :  { %v285_v19 = vmul.f32 %v602_v18, %v190_v16  ;;  %v289_v21 = vmul.f32 %v602_v18, %v200_v17 }
  0xa1   :  { %v305_v26 = vadd.f32 %v608_v20, %v285_v19  ;;  %v309_v27 = vadd.f32 %v608_v20, %v289_v21 }
  0xa3   :  { %v321_v34 = vmax.f32 %v305_v26, 0.0  ;;  %v325_v35 = vmax.f32 %v309_v27, 0.0 }
  0xa5   :  { %v210_v22 = vpop.f32.mrf.mxu2  ;;  %v220_v23 = vpop.f32.mrf.mxu3 }
  0xa6   :  { %v192_v24 = vpop.f32.mrf.mxu0  ;;  %v202_v25 = vpop.f32.mrf.mxu1  ;;  %v293_v32 = vmul.f32 %v602_v18, %v210_v22  ;;  %v297_v33 = vmul.f32 %v602_v18, %v220_v23 }
  0xa7   :  { %v286_v28 = vmul.f32 %v602_v18, %v192_v24  ;;  %v290_v29 = vmul.f32 %v602_v18, %v202_v25 }
  0xa8   :  { %v313_v42 = vadd.f32 %v608_v20, %v293_v32  ;;  %v317_v43 = vadd.f32 %v608_v20, %v297_v33 }
  0xa9   :  { %v306_v30 = vadd.f32 %v608_v20, %v286_v28  ;;  %v310_v31 = vadd.f32 %v608_v20, %v290_v29 }
  0xaa   :  { %v329_v50 = vmax.f32 %v313_v42, 0.0  ;;  %v333_v51 = vmax.f32 %v317_v43, 0.0 }
  0xab   :  { %v322_v36 = vmax.f32 %v306_v30, 0.0  ;;  %v326_v37 = vmax.f32 %v310_v31, 0.0 }
  0xad   :  { %v456_v38 = vpack.c.bf16 %v322_v36, %v321_v34  ;;  %v466_v39 = vpack.c.bf16 %v326_v37, %v325_v35  ;;  %v212_v40 = vpop.f32.mrf.mxu2  ;;  %v222_v41 = vpop.f32.mrf.mxu3 }
  0xae   :  { %v294_v44 = vmul.f32 %v602_v18, %v212_v40  ;;  %v298_v45 = vmul.f32 %v602_v18, %v222_v41  ;;  %v195_v46 = vpop.f32.mrf.mxu0  ;;  %v205_v47 = vpop.f32.mrf.mxu1 }
  0xaf   :  { %457 = vst [vmem:[%s669_s4] sm:$0xff] %v456_v38   ;;  %v287_v54 = vmul.f32 %v602_v18, %v195_v46  ;;  %v291_v55 = vmul.f32 %v602_v18, %v205_v47 }
  0xb0   :  { %494 = vst [vmem:[%s669_s4 + $0x10] sm:$0xff] %v466_v39   ;;  %v314_v48 = vadd.f32 %v608_v20, %v294_v44  ;;  %v318_v49 = vadd.f32 %v608_v20, %v298_v45 }
  0xb1   :  { %v307_v62 = vadd.f32 %v608_v20, %v287_v54  ;;  %v311_v63 = vadd.f32 %v608_v20, %v291_v55 }
  0xb2   :  { %v330_v52 = vmax.f32 %v314_v48, 0.0  ;;  %v334_v53 = vmax.f32 %v318_v49, 0.0 }
  0xb3   :  { %v323_v6 = vmax.f32 %v307_v62, 0.0  ;;  %v327_v7 = vmax.f32 %v311_v63, 0.0 }
  0xb4   :  { %v476_v56 = vpack.c.bf16 %v330_v52, %v329_v50  ;;  %v486_v57 = vpack.c.bf16 %v334_v53, %v333_v51 }
  0xb5   :  { %v215_v58 = vpop.f32.mrf.mxu2  ;;  %v225_v59 = vpop.f32.mrf.mxu3 }
  0xb6   :  { %496 = vst [vmem:[%s669_s4 + $0x20] sm:$0xff] %v476_v56   ;;  %v197_v60 = vpop.f32.mrf.mxu0  ;;  %v207_v61 = vpop.f32.mrf.mxu1  ;;  %v295_v4 = vmul.f32 %v602_v18, %v215_v58  ;;  %v299_v5 = vmul.f32 %v602_v18, %v225_v59 }
  0xb7   :  { %498 = vst [vmem:[%s669_s4 + $0x30] sm:$0xff] %v486_v57   ;;  %v288_v0 = vmul.f32 %v602_v18, %v197_v60  ;;  %v292_v1 = vmul.f32 %v602_v18, %v207_v61 }
  0xb8   :  { %v315_v14 = vadd.f32 %v608_v20, %v295_v4  ;;  %v319_v15 = vadd.f32 %v608_v20, %v299_v5 }
  0xb9   :  { %v308_v2 = vadd.f32 %v608_v20, %v288_v0  ;;  %v312_v3 = vadd.f32 %v608_v20, %v292_v1 }
  0xba   :  { %v331_v22 = vmax.f32 %v315_v14, 0.0  ;;  %v335_v23 = vmax.f32 %v319_v15, 0.0 }
  0xbb   :  { %v324_v8 = vmax.f32 %v308_v2, 0.0  ;;  %v328_v9 = vmax.f32 %v312_v3, 0.0 }
  0xbd   :  { %v461_v10 = vpack.c.bf16 %v324_v8, %v323_v6  ;;  %v471_v11 = vpack.c.bf16 %v328_v9, %v327_v7  ;;  %v217_v12 = vpop.f32.mrf.mxu2  ;;  %v227_v13 = vpop.f32.mrf.mxu3 }
  0xbe   :  { %v296_v16 = vmul.f32 %v602_v18, %v217_v12  ;;  %v300_v17 = vmul.f32 %v602_v18, %v227_v13 }
  0xbf   :  { %493 = vst [vmem:[%s669_s4 + $0x8] sm:$0xff] %v461_v10  }
  0xc0   :  { %495 = vst [vmem:[%s669_s4 + $0x18] sm:$0xff] %v471_v11   ;;  %v316_v19 = vadd.f32 %v608_v20, %v296_v16  ;;  %v320_v21 = vadd.f32 %v608_v20, %v300_v17 }
  0xc2   :  { %v332_v24 = vmax.f32 %v316_v19, 0.0  ;;  %v336_v25 = vmax.f32 %v320_v21, 0.0 }
  0xc4   :  { %v481_v26 = vpack.c.bf16 %v332_v24, %v331_v22  ;;  %v491_v27 = vpack.c.bf16 %v336_v25, %v335_v23 }
  0xc6   :  { %497 = vst [vmem:[%s669_s4 + $0x28] sm:$0xff] %v481_v26  }
  0xc7   :  { %499 = vst [vmem:[%s669_s4 + $0x38] sm:$0xff] %v491_v27  }

// kernel: bottleneck_forward.6
= control target key start
LH: loop header
LB: loop body
LE: loop exit
PB: predicated region body
PF: predicated region fallthrough
CT: control target
= control target key end

     0   :  { %s961_s1 = inlined_call_operand.vmem [shape: bf16[128,256], index: 1, kind: input, shape index: {}]   ;;  %s962_s0 = inlined_call_operand.vmem [shape: bf16[128,128], index: 0, kind: input, shape index: {}]   ;;  %s963_s2 = inlined_call_operand.vmem [shape: f32[1,256], index: 2, kind: input, shape index: {}]   ;;  %s964_s3 = inlined_call_operand.vmem [shape: f32[1,256], index: 3, kind: input, shape index: {}]   ;;  %s965_s4 = inlined_call_operand.vmem [shape: bf16[128,256], index: 4, kind: output, shape index: {}]  }
   0x1   :  { %v644_v0 = vld [vmem:[%s961_s1 + $0x70] sm:$0xf]  ;;  %v673_v1 = vld [vmem:[%s961_s1 + $0x74] sm:$0xf0]  ;;  %v672_v2 = vld [vmem:[%s961_s1 + $0x74] sm:$0xf] }
   0x2   :  { %v645_v3 = vor.u32 %v673_v1, %v644_v0  ;;  %v646_v4 = vld [vmem:[%s961_s1 + $0x78] sm:$0xf0]  ;;  %v636_v5 = vld [vmem:[%s961_s1 + $0x60] sm:$0xf]  ;;  %v671_v6 = vld [vmem:[%s961_s1 + $0x64] sm:$0xf0] }
   0x3   :  { %v649_v7 = vor.u32 %v672_v2, %v646_v4  ;;  %v670_v8 = vld [vmem:[%s961_s1 + $0x64] sm:$0xf]  ;;  %v638_v9 = vld [vmem:[%s961_s1 + $0x68] sm:$0xf0]  ;;  %v637_v10 = vor.u32 %v671_v6, %v636_v5  ;;  %v628_v12 = vld [vmem:[%s961_s1 + $0x50] sm:$0xf] }
   0x4   :  { %245 = vmatpush.bf16.msra.mxu0 %v645_v3  ;;  %674 = vmatpush.bf16.msra.mxu2 %v645_v3  ;;  %v641_v11 = vor.u32 %v670_v8, %v638_v9  ;;  %v669_v13 = vld [vmem:[%s961_s1 + $0x54] sm:$0xf0]  ;;  %v668_v14 = vld [vmem:[%s961_s1 + $0x54] sm:$0xf]  ;;  %v630_v15 = vld [vmem:[%s961_s1 + $0x58] sm:$0xf0] }
   0x5   :  { %294 = vmatpush.bf16.msra.mxu1 %v649_v7  ;;  %682 = vmatpush.bf16.msra.mxu3 %v649_v7  ;;  %v629_v16 = vor.u32 %v669_v13, %v628_v12  ;;  %v633_v17 = vor.u32 %v668_v14, %v630_v15  ;;  %v620_v18 = vld [vmem:[%s961_s1 + $0x40] sm:$0xf]  ;;  %v667_v19 = vld [vmem:[%s961_s1 + $0x44] sm:$0xf0]  ;;  %v666_v20 = vld [vmem:[%s961_s1 + $0x44] sm:$0xf] }
   0x6   :  { %v622_v21 = vld [vmem:[%s961_s1 + $0x48] sm:$0xf0]  ;;  %v621_v22 = vor.u32 %v667_v19, %v620_v18  ;;  %v612_v24 = vld [vmem:[%s961_s1 + $0x30] sm:$0xf]  ;;  %v665_v25 = vld [vmem:[%s961_s1 + $0x34] sm:$0xf0] }
   0x7   :  { %v625_v23 = vor.u32 %v666_v20, %v622_v21  ;;  %v664_v26 = vld [vmem:[%s961_s1 + $0x34] sm:$0xf]  ;;  %v614_v27 = vld [vmem:[%s961_s1 + $0x38] sm:$0xf0]  ;;  %v613_v28 = vor.u32 %v665_v25, %v612_v24  ;;  %v604_v30 = vld [vmem:[%s961_s1 + $0x20] sm:$0xf] }
   0x8   :  { %246 = vmatpush.bf16.msra.mxu0 %v637_v10  ;;  %675 = vmatpush.bf16.msra.mxu2 %v637_v10  ;;  %v617_v29 = vor.u32 %v664_v26, %v614_v27  ;;  %v663_v31 = vld [vmem:[%s961_s1 + $0x24] sm:$0xf0]  ;;  %v662_v32 = vld [vmem:[%s961_s1 + $0x24] sm:$0xf]  ;;  %v606_v33 = vld [vmem:[%s961_s1 + $0x28] sm:$0xf0] }
   0x9   :  { %295 = vmatpush.bf16.msra.mxu1 %v641_v11  ;;  %683 = vmatpush.bf16.msra.mxu3 %v641_v11  ;;  %v605_v34 = vor.u32 %v663_v31, %v604_v30  ;;  %v609_v35 = vor.u32 %v662_v32, %v606_v33  ;;  %v596_v36 = vld [vmem:[%s961_s1 + $0x10] sm:$0xf]  ;;  %v661_v37 = vld [vmem:[%s961_s1 + $0x14] sm:$0xf0]  ;;  %v660_v38 = vld [vmem:[%s961_s1 + $0x14] sm:$0xf] }
   0xa   :  { %v598_v39 = vld [vmem:[%s961_s1 + $0x18] sm:$0xf0]  ;;  %v597_v40 = vor.u32 %v661_v37, %v596_v36  ;;  %v588_v42 = vld [vmem:[%s961_s1] sm:$0xf]  ;;  %v659_v43 = vld [vmem:[%s961_s1 + $0x4] sm:$0xf0] }
   0xb   :  { %v601_v41 = vor.u32 %v660_v38, %v598_v39  ;;  %v658_v44 = vld [vmem:[%s961_s1 + $0x4] sm:$0xf]  ;;  %v590_v45 = vld [vmem:[%s961_s1 + $0x8] sm:$0xf0]  ;;  %v589_v46 = vor.u32 %v659_v43, %v588_v42  ;;  %v652_v52 = vld [vmem:[%s962_s0 + $0x10] sm:$0xff] }
   0xc   :  { %247 = vmatpush.bf16.msra.mxu0 %v629_v16  ;;  %676 = vmatpush.bf16.msra.mxu2 %v629_v16  ;;  %v593_v47 = vor.u32 %v658_v44, %v590_v45  ;;  %v650_v48 = vld [vmem:[%s962_s0] sm:$0xff]  ;;  %v651_v50 = vld [vmem:[%s962_s0 + $0x8] sm:$0xff]  ;;  %v656_v53 = vld [vmem:[%s962_s0 + $0x30] sm:$0xff] }
   0xd   :  { %296 = vmatpush.bf16.msra.mxu1 %v633_v17  ;;  %684 = vmatpush.bf16.msra.mxu3 %v633_v17  ;;  %v654_v49 = vld [vmem:[%s962_s0 + $0x20] sm:$0xff]  ;;  %v655_v51 = vld [vmem:[%s962_s0 + $0x28] sm:$0xff]  ;;  %v653_v54 = vld [vmem:[%s962_s0 + $0x18] sm:$0xff] }
   0xe   :  { %v657_v55 = vld [vmem:[%s962_s0 + $0x38] sm:$0xff]  ;;  %v442_v56 = vld [vmem:[%s963_s2] sm:$0x3] }
   0xf   :  { %v480_v57 = vld [vmem:[%s964_s3] sm:$0x3]  ;;  %v841_v58 = vperm.slane %v442_v56, 0  ;;  %v843_v59 = vperm.slane %v442_v56, 1 }
  0x10   :  { %248 = vmatpush.bf16.msra.mxu0 %v621_v22  ;;  %677 = vmatpush.bf16.msra.mxu2 %v621_v22  ;;  %v845_v60 = vperm.slane %v480_v57, 0  ;;  %v847_v62 = vperm.slane %v480_v57, 1 }
  0x11   :  { %297 = vmatpush.bf16.msra.mxu1 %v625_v23  ;;  %685 = vmatpush.bf16.msra.mxu3 %v625_v23 }
  0x14   :  { %249 = vmatpush.bf16.msra.mxu0 %v613_v28  ;;  %678 = vmatpush.bf16.msra.mxu2 %v613_v28 }
  0x15   :  { %298 = vmatpush.bf16.msra.mxu1 %v617_v29  ;;  %686 = vmatpush.bf16.msra.mxu3 %v617_v29 }
  0x18   :  { %250 = vmatpush.bf16.msra.mxu0 %v605_v34  ;;  %679 = vmatpush.bf16.msra.mxu2 %v605_v34 }
  0x19   :  { %299 = vmatpush.bf16.msra.mxu1 %v609_v35  ;;  %687 = vmatpush.bf16.msra.mxu3 %v609_v35 }
  0x1c   :  { %251 = vmatpush.bf16.msra.mxu0 %v597_v40  ;;  %680 = vmatpush.bf16.msra.mxu2 %v597_v40 }
  0x1d   :  { %300 = vmatpush.bf16.msra.mxu1 %v601_v41  ;;  %688 = vmatpush.bf16.msra.mxu3 %v601_v41 }
  0x20   :  { %252 = vmatpush.bf16.msra.mxu0 %v589_v46  ;;  %681 = vmatpush.bf16.msra.mxu2 %v589_v46 }
  0x21   :  { %301 = vmatpush.bf16.msra.mxu1 %v593_v47  ;;  %689 = vmatpush.bf16.msra.mxu3 %v593_v47 }
  0x23   :  { %253 = vmatmul.bf16.vlgmr.msra.gmra.mxu0 %v650_v48  ;;  %273 = vmatmul.bf16.vlgmr.msra.gmra.mxu2 %v654_v49 }
  0x24   :  { %302 = vmatmul.bf16.vlgmr.msra.gmra.mxu1 %v650_v48  ;;  %322 = vmatmul.bf16.vlgmr.msra.gmra.mxu3 %v654_v49 }
  0x33   :  { %258 = vmatmul.bf16.gmra.mxu0 %v651_v50  ;;  %278 = vmatmul.bf16.gmra.mxu2 %v655_v51 }
  0x34   :  { %307 = vmatmul.bf16.gmra.mxu1 %v651_v50  ;;  %327 = vmatmul.bf16.gmra.mxu3 %v655_v51 }
  0x43   :  { %263 = vmatmul.bf16.gmra.mxu0 %v652_v52  ;;  %283 = vmatmul.bf16.gmra.mxu2 %v656_v53 }
  0x44   :  { %312 = vmatmul.bf16.gmra.mxu1 %v652_v52  ;;  %332 = vmatmul.bf16.gmra.mxu3 %v656_v53 }
  0x53   :  { %268 = vmatmul.bf16.gmra.mxu0 %v653_v54  ;;  %288 = vmatmul.bf16.gmra.mxu2 %v657_v55 }
  0x54   :  { %317 = vmatmul.bf16.gmra.mxu1 %v653_v54  ;;  %337 = vmatmul.bf16.gmra.mxu3 %v657_v55 }
  0xa0   :  { %v254_v61 = vpop.f32.mrf.mxu0 }
  0xa1   :  { %v448_v63 = vmul.f32 %v841_v58, %v254_v61  ;;  %v303_v0 = vpop.f32.mrf.mxu1 }
  0xa2   :  { %v449_v1 = vmul.f32 %v843_v59, %v303_v0 }
  0xa3   :  { %v486_v2 = vadd.f32 %v845_v60, %v448_v63 }
  0xa4   :  { %v487_v3 = vadd.f32 %v847_v62, %v449_v1 }
  0xa6   :  { %v518_v4 = vpack.c.bf16 %v487_v3, %v486_v2  ;;  %v274_v5 = vpop.f32.mrf.mxu2 }
  0xa7   :  { %v464_v6 = vmul.f32 %v841_v58, %v274_v5  ;;  %v323_v7 = vpop.f32.mrf.mxu3 }
  0xa8   :  { %534 = vst [vmem:[%s965_s4] sm:$0xff] %v518_v4  ;;  %v465_v8 = vmul.f32 %v843_v59, %v323_v7  ;;  %v256_v9 = vpop.f32.mrf.mxu0 }
  0xa9   :  { %v502_v10 = vadd.f32 %v845_v60, %v464_v6  ;;  %v450_v11 = vmul.f32 %v841_v58, %v256_v9  ;;  %v305_v12 = vpop.f32.mrf.mxu1 }
  0xaa   :  { %v503_v13 = vadd.f32 %v847_v62, %v465_v8  ;;  %v451_v14 = vmul.f32 %v843_v59, %v305_v12 }
  0xab   :  { %v488_v15 = vadd.f32 %v845_v60, %v450_v11 }
  0xac   :  { %v526_v16 = vpack.c.bf16 %v503_v13, %v502_v10  ;;  %v489_v17 = vadd.f32 %v847_v62, %v451_v14 }
  0xae   :  { %542 = vst [vmem:[%s965_s4 + $0x40] sm:$0xff] %v526_v16  ;;  %v519_v18 = vpack.c.bf16 %v489_v17, %v488_v15  ;;  %v276_v19 = vpop.f32.mrf.mxu2 }
  0xaf   :  { %v466_v20 = vmul.f32 %v841_v58, %v276_v19  ;;  %v325_v21 = vpop.f32.mrf.mxu3 }
  0xb0   :  { %535 = vst [vmem:[%s965_s4 + $0x8] sm:$0xff] %v519_v18  ;;  %v467_v22 = vmul.f32 %v843_v59, %v325_v21  ;;  %v259_v23 = vpop.f32.mrf.mxu0 }
  0xb1   :  { %v504_v24 = vadd.f32 %v845_v60, %v466_v20  ;;  %v452_v25 = vmul.f32 %v841_v58, %v259_v23  ;;  %v308_v26 = vpop.f32.mrf.mxu1 }
  0xb2   :  { %v505_v27 = vadd.f32 %v847_v62, %v467_v22  ;;  %v453_v28 = vmul.f32 %v843_v59, %v308_v26 }
  0xb3   :  { %v490_v29 = vadd.f32 %v845_v60, %v452_v25 }
  0xb4   :  { %v527_v30 = vpack.c.bf16 %v505_v27, %v504_v24  ;;  %v491_v31 = vadd.f32 %v847_v62, %v453_v28 }
  0xb6   :  { %543 = vst [vmem:[%s965_s4 + $0x48] sm:$0xff] %v527_v30  ;;  %v520_v32 = vpack.c.bf16 %v491_v31, %v490_v29  ;;  %v279_v33 = vpop.f32.mrf.mxu2 }
  0xb7   :  { %v468_v34 = vmul.f32 %v841_v58, %v279_v33  ;;  %v328_v35 = vpop.f32.mrf.mxu3 }
  0xb8   :  { %536 = vst [vmem:[%s965_s4 + $0x10] sm:$0xff] %v520_v32  ;;  %v469_v36 = vmul.f32 %v843_v59, %v328_v35  ;;  %v261_v37 = vpop.f32.mrf.mxu0 }
  0xb9   :  { %v506_v38 = vadd.f32 %v845_v60, %v468_v34  ;;  %v454_v39 = vmul.f32 %v841_v58, %v261_v37  ;;  %v310_v40 = vpop.f32.mrf.mxu1 }
  0xba   :  { %v507_v41 = vadd.f32 %v847_v62, %v469_v36  ;;  %v455_v42 = vmul.f32 %v843_v59, %v310_v40 }
  0xbb   :  { %v492_v43 = vadd.f32 %v845_v60, %v454_v39 }
  0xbc   :  { %v528_v44 = vpack.c.bf16 %v507_v41, %v506_v38  ;;  %v493_v45 = vadd.f32 %v847_v62, %v455_v42 }
  0xbe   :  { %544 = vst [vmem:[%s965_s4 + $0x50] sm:$0xff] %v528_v44  ;;  %v521_v46 = vpack.c.bf16 %v493_v45, %v492_v43  ;;  %v281_v47 = vpop.f32.mrf.mxu2 }
  0xbf   :  { %v470_v48 = vmul.f32 %v841_v58, %v281_v47  ;;  %v330_v49 = vpop.f32.mrf.mxu3 }
  0xc0   :  { %537 = vst [vmem:[%s965_s4 + $0x18] sm:$0xff] %v521_v46  ;;  %v471_v50 = vmul.f32 %v843_v59, %v330_v49  ;;  %v264_v51 = vpop.f32.mrf.mxu0 }
  0xc1   :  { %v508_v52 = vadd.f32 %v845_v60, %v470_v48  ;;  %v456_v53 = vmul.f32 %v841_v58, %v264_v51  ;;  %v313_v54 = vpop.f32.mrf.mxu1 }
  0xc2   :  { %v509_v55 = vadd.f32 %v847_v62, %v471_v50  ;;  %v457_v56 = vmul.f32 %v843_v59, %v313_v54 }
  0xc3   :  { %v494_v57 = vadd.f32 %v845_v60, %v456_v53 }
  0xc4   :  { %v529_v61 = vpack.c.bf16 %v509_v55, %v508_v52  ;;  %v495_v63 = vadd.f32 %v847_v62, %v457_v56 }
  0xc6   :  { %545 = vst [vmem:[%s965_s4 + $0x58] sm:$0xff] %v529_v61  ;;  %v522_v0 = vpack.c.bf16 %v495_v63, %v494_v57  ;;  %v284_v1 = vpop.f32.mrf.mxu2 }
  0xc7   :  { %v472_v2 = vmul.f32 %v841_v58, %v284_v1  ;;  %v333_v3 = vpop.f32.mrf.mxu3 }
  0xc8   :  { %538 = vst [vmem:[%s965_s4 + $0x20] sm:$0xff] %v522_v0  ;;  %v473_v4 = vmul.f32 %v843_v59, %v333_v3  ;;  %v266_v5 = vpop.f32.mrf.mxu0 }
  0xc9   :  { %v510_v6 = vadd.f32 %v845_v60, %v472_v2  ;;  %v458_v7 = vmul.f32 %v841_v58, %v266_v5  ;;  %v315_v8 = vpop.f32.mrf.mxu1 }
  0xca   :  { %v511_v9 = vadd.f32 %v847_v62, %v473_v4  ;;  %v459_v10 = vmul.f32 %v843_v59, %v315_v8 }
  0xcb   :  { %v496_v11 = vadd.f32 %v845_v60, %v458_v7 }
  0xcc   :  { %v530_v12 = vpack.c.bf16 %v511_v9, %v510_v6  ;;  %v497_v13 = vadd.f32 %v847_v62, %v459_v10 }
  0xce   :  { %546 = vst [vmem:[%s965_s4 + $0x60] sm:$0xff] %v530_v12  ;;  %v523_v14 = vpack.c.bf16 %v497_v13, %v496_v11  ;;  %v286_v15 = vpop.f32.mrf.mxu2 }
  0xcf   :  { %v474_v16 = vmul.f32 %v841_v58, %v286_v15  ;;  %v335_v17 = vpop.f32.mrf.mxu3 }
  0xd0   :  { %539 = vst [vmem:[%s965_s4 + $0x28] sm:$0xff] %v523_v14  ;;  %v475_v18 = vmul.f32 %v843_v59, %v335_v17  ;;  %v269_v19 = vpop.f32.mrf.mxu0 }
  0xd1   :  { %v512_v20 = vadd.f32 %v845_v60, %v474_v16  ;;  %v460_v21 = vmul.f32 %v841_v58, %v269_v19  ;;  %v318_v22 = vpop.f32.mrf.mxu1 }
  0xd2   :  { %v513_v23 = vadd.f32 %v847_v62, %v475_v18  ;;  %v461_v24 = vmul.f32 %v843_v59, %v318_v22 }
  0xd3   :  { %v498_v25 = vadd.f32 %v845_v60, %v460_v21 }
  0xd4   :  { %v531_v26 = vpack.c.bf16 %v513_v23, %v512_v20  ;;  %v499_v27 = vadd.f32 %v847_v62, %v461_v24 }
  0xd6   :  { %547 = vst [vmem:[%s965_s4 + $0x68] sm:$0xff] %v531_v26  ;;  %v524_v28 = vpack.c.bf16 %v499_v27, %v498_v25  ;;  %v289_v29 = vpop.f32.mrf.mxu2 }
  0xd7   :  { %v476_v30 = vmul.f32 %v841_v58, %v289_v29  ;;  %v338_v31 = vpop.f32.mrf.mxu3 }
  0xd8   :  { %540 = vst [vmem:[%s965_s4 + $0x30] sm:$0xff] %v524_v28  ;;  %v477_v32 = vmul.f32 %v843_v59, %v338_v31  ;;  %v271_v33 = vpop.f32.mrf.mxu0 }
  0xd9   :  { %v514_v34 = vadd.f32 %v845_v60, %v476_v30  ;;  %v462_v35 = vmul.f32 %v841_v58, %v271_v33  ;;  %v320_v36 = vpop.f32.mrf.mxu1 }
  0xda   :  { %v515_v37 = vadd.f32 %v847_v62, %v477_v32  ;;  %v463_v38 = vmul.f32 %v843_v59, %v320_v36 }
  0xdb   :  { %v500_v39 = vadd.f32 %v845_v60, %v462_v35 }
  0xdc   :  { %v532_v40 = vpack.c.bf16 %v515_v37, %v514_v34  ;;  %v501_v41 = vadd.f32 %v847_v62, %v463_v38 }
  0xde   :  { %548 = vst [vmem:[%s965_s4 + $0x70] sm:$0xff] %v532_v40  ;;  %v525_v42 = vpack.c.bf16 %v501_v41, %v500_v39  ;;  %v291_v43 = vpop.f32.mrf.mxu2 }
  0xdf   :  { %v478_v44 = vmul.f32 %v841_v58, %v291_v43  ;;  %v340_v45 = vpop.f32.mrf.mxu3 }
  0xe0   :  { %541 = vst [vmem:[%s965_s4 + $0x38] sm:$0xff] %v525_v42  ;;  %v479_v46 = vmul.f32 %v843_v59, %v340_v45 }
  0xe1   :  { %v516_v47 = vadd.f32 %v845_v60, %v478_v44 }
  0xe2   :  { %v517_v48 = vadd.f32 %v847_v62, %v479_v46 }
  0xe4   :  { %v533_v49 = vpack.c.bf16 %v517_v48, %v516_v47 }
  0xe6   :  { %549 = vst [vmem:[%s965_s4 + $0x78] sm:$0xff] %v533_v49 }

// kernel: bottleneck_forward.7
= control target key start
LH: loop header
LB: loop body
LE: loop exit
PB: predicated region body
PF: predicated region fallthrough
CT: control target
= control target key end

     0   :  { %s1131_s0 = inlined_call_operand.vmem [shape: bf16[128,128], index: 0, kind: input, shape index: {}]   ;;  %s1132_s1 = inlined_call_operand.vmem [shape: bf16[128,256], index: 1, kind: input, shape index: {}]   ;;  %s1133_s2 = inlined_call_operand.vmem [shape: f32[1,256], index: 2, kind: input, shape index: {}]   ;;  %s1134_s3 = inlined_call_operand.vmem [shape: f32[1,256], index: 3, kind: input, shape index: {}]   ;;  %s1135_s4 = inlined_call_operand.vmem [shape: bf16[128,256], index: 4, kind: input, shape index: {}]   ;;  %s1136_s5 = inlined_call_operand.hbm [shape: f32[128,256], index: 5, kind: output, shape index: {}]  }
   0x1   :  { %v774_v0 = vld [vmem:[%s1132_s1 + $0x70] sm:$0xf]  ;;  %v803_v1 = vld [vmem:[%s1132_s1 + $0x74] sm:$0xf0]  ;;  %v802_v2 = vld [vmem:[%s1132_s1 + $0x74] sm:$0xf] }
   0x2   :  { %v775_v3 = vor.u32 %v803_v1, %v774_v0  ;;  %v776_v4 = vld [vmem:[%s1132_s1 + $0x78] sm:$0xf0]  ;;  %v766_v5 = vld [vmem:[%s1132_s1 + $0x60] sm:$0xf]  ;;  %v801_v6 = vld [vmem:[%s1132_s1 + $0x64] sm:$0xf0] }
   0x3   :  { %v779_v7 = vor.u32 %v802_v2, %v776_v4  ;;  %v800_v8 = vld [vmem:[%s1132_s1 + $0x64] sm:$0xf]  ;;  %v768_v9 = vld [vmem:[%s1132_s1 + $0x68] sm:$0xf0]  ;;  %v767_v10 = vor.u32 %v801_v6, %v766_v5  ;;  %v758_v12 = vld [vmem:[%s1132_s1 + $0x50] sm:$0xf] }
   0x4   :  { %249 = vmatpush.bf16.msra.mxu0 %v775_v3  ;;  %804 = vmatpush.bf16.msra.mxu2 %v775_v3  ;;  %v771_v11 = vor.u32 %v800_v8, %v768_v9  ;;  %v799_v13 = vld [vmem:[%s1132_s1 + $0x54] sm:$0xf0]  ;;  %v798_v14 = vld [vmem:[%s1132_s1 + $0x54] sm:$0xf]  ;;  %v760_v15 = vld [vmem:[%s1132_s1 + $0x58] sm:$0xf0] }
   0x5   :  { %298 = vmatpush.bf16.msra.mxu1 %v779_v7  ;;  %812 = vmatpush.bf16.msra.mxu3 %v779_v7  ;;  %v759_v16 = vor.u32 %v799_v13, %v758_v12  ;;  %v763_v17 = vor.u32 %v798_v14, %v760_v15  ;;  %v750_v18 = vld [vmem:[%s1132_s1 + $0x40] sm:$0xf]  ;;  %v797_v19 = vld [vmem:[%s1132_s1 + $0x44] sm:$0xf0]  ;;  %v796_v20 = vld [vmem:[%s1132_s1 + $0x44] sm:$0xf] }
   0x6   :  { %v752_v21 = vld [vmem:[%s1132_s1 + $0x48] sm:$0xf0]  ;;  %v751_v22 = vor.u32 %v797_v19, %v750_v18 }
   0x8   :  { %250 = vmatpush.bf16.msra.mxu0 %v767_v10  ;;  %805 = vmatpush.bf16.msra.mxu2 %v767_v10 }
   0x9   :  { %299 = vmatpush.bf16.msra.mxu1 %v771_v11  ;;  %813 = vmatpush.bf16.msra.mxu3 %v771_v11 }
   0xc   :  { %251 = vmatpush.bf16.msra.mxu0 %v759_v16  ;;  %806 = vmatpush.bf16.msra.mxu2 %v759_v16 }
   0xd   :  { %10 = vsyncpa [#allocation4], 0  ;;  %300 = vmatpush.bf16.msra.mxu1 %v763_v17  ;;  %814 = vmatpush.bf16.msra.mxu3 %v763_v17  ;;  %v755_v23 = vor.u32 %v796_v20, %v752_v21  ;;  %v742_v24 = vld [vmem:[%s1132_s1 + $0x30] sm:$0xf]  ;;  %v795_v25 = vld [vmem:[%s1132_s1 + $0x34] sm:$0xf0] }
   0xe   :  { %v794_v26 = vld [vmem:[%s1132_s1 + $0x34] sm:$0xf]  ;;  %v744_v27 = vld [vmem:[%s1132_s1 + $0x38] sm:$0xf0]  ;;  %v743_v28 = vor.u32 %v795_v25, %v742_v24  ;;  %v734_v30 = vld [vmem:[%s1132_s1 + $0x20] sm:$0xf] }
   0xf   :  { %v747_v29 = vor.u32 %v794_v26, %v744_v27  ;;  %v793_v31 = vld [vmem:[%s1132_s1 + $0x24] sm:$0xf0]  ;;  %v792_v32 = vld [vmem:[%s1132_s1 + $0x24] sm:$0xf]  ;;  %v736_v33 = vld [vmem:[%s1132_s1 + $0x28] sm:$0xf0] }
  0x10   :  { %252 = vmatpush.bf16.msra.mxu0 %v751_v22  ;;  %807 = vmatpush.bf16.msra.mxu2 %v751_v22  ;;  %v735_v34 = vor.u32 %v793_v31, %v734_v30  ;;  %v739_v35 = vor.u32 %v792_v32, %v736_v33  ;;  %v726_v36 = vld [vmem:[%s1132_s1 + $0x10] sm:$0xf]  ;;  %v791_v37 = vld [vmem:[%s1132_s1 + $0x14] sm:$0xf0]  ;;  %v790_v38 = vld [vmem:[%s1132_s1 + $0x14] sm:$0xf] }
  0x11   :  { %301 = vmatpush.bf16.msra.mxu1 %v755_v23  ;;  %815 = vmatpush.bf16.msra.mxu3 %v755_v23  ;;  %v728_v39 = vld [vmem:[%s1132_s1 + $0x18] sm:$0xf0]  ;;  %v727_v40 = vor.u32 %v791_v37, %v726_v36  ;;  %v718_v42 = vld [vmem:[%s1132_s1] sm:$0xf]  ;;  %v789_v43 = vld [vmem:[%s1132_s1 + $0x4] sm:$0xf0] }
  0x12   :  { %v731_v41 = vor.u32 %v790_v38, %v728_v39  ;;  %v788_v44 = vld [vmem:[%s1132_s1 + $0x4] sm:$0xf]  ;;  %v720_v45 = vld [vmem:[%s1132_s1 + $0x8] sm:$0xf0]  ;;  %v719_v46 = vor.u32 %v789_v43, %v718_v42  ;;  %v782_v52 = vld [vmem:[%s1131_s0 + $0x10] sm:$0xff]  ;;  %s672_s29 = sshll.u32 %s1136_s5, 4  ;;  %s673_s29 = int_to_ptr.hbm [resolvable:$true] %s672_s29 }
  0x13   :  { %v723_v47 = vor.u32 %v788_v44, %v720_v45  ;;  %v780_v48 = vld [vmem:[%s1131_s0] sm:$0xff]  ;;  %v781_v50 = vld [vmem:[%s1131_s0 + $0x8] sm:$0xff]  ;;  %v786_v53 = vld [vmem:[%s1131_s0 + $0x30] sm:$0xff]  ;;  %s850_s30 = smov 256   ;;  %s851_s6 = smov 16  }
  0x14   :  { %253 = vmatpush.bf16.msra.mxu0 %v743_v28  ;;  %808 = vmatpush.bf16.msra.mxu2 %v743_v28  ;;  %v784_v49 = vld [vmem:[%s1131_s0 + $0x20] sm:$0xff]  ;;  %v785_v51 = vld [vmem:[%s1131_s0 + $0x28] sm:$0xff]  ;;  %v783_v54 = vld [vmem:[%s1131_s0 + $0x18] sm:$0xff] }
  0x15   :  { %302 = vmatpush.bf16.msra.mxu1 %v747_v29  ;;  %816 = vmatpush.bf16.msra.mxu3 %v747_v29  ;;  %v787_v55 = vld [vmem:[%s1131_s0 + $0x38] sm:$0xff]  ;;  %v446_v56 = vld [vmem:[%s1133_s2] sm:$0x3]  ;;  %v523_v11 = vld [vmem:[%s1135_s4 + $0x8] sm:$0xff] }
  0x16   :  { %v484_v57 = vld [vmem:[%s1134_s3] sm:$0x3]  ;;  %v1008_v58 = vperm.slane %v446_v56, 0  ;;  %v1013_v60 = vperm.slane %v446_v56, 1  ;;  %v540_v22 = vunpack.c.l.bf16 %v523_v11  ;;  %v541_v26 = vunpack.c.h.bf16 %v523_v11  ;;  %v531_v31 = vld [vmem:[%s1135_s4 + $0x48] sm:$0xff]  ;;  %v524_v37 = vld [vmem:[%s1135_s4 + $0x10] sm:$0xff] }
  0x17   :  { %v522_v59 = vld [vmem:[%s1135_s4] sm:$0xff]  ;;  %v1015_v61 = vperm.slane %v484_v57, 0  ;;  %v1017_v63 = vperm.slane %v484_v57, 1  ;;  %v557_v44 = vunpack.c.h.bf16 %v531_v31  ;;  %v532_v57 = vld [vmem:[%s1135_s4 + $0x50] sm:$0xff] }
  0x18   :  { %254 = vmatpush.bf16.msra.mxu0 %v735_v34  ;;  %809 = vmatpush.bf16.msra.mxu2 %v735_v34  ;;  %v538_v1 = vunpack.c.l.bf16 %v522_v59  ;;  %v539_v4 = vunpack.c.h.bf16 %v522_v59  ;;  %v530_v7 = vld [vmem:[%s1135_s4 + $0x40] sm:$0xff] }
  0x19   :  { %303 = vmatpush.bf16.msra.mxu1 %v739_v35  ;;  %817 = vmatpush.bf16.msra.mxu3 %v739_v35  ;;  %v554_v14 = vunpack.c.l.bf16 %v530_v7  ;;  %v555_v18 = vunpack.c.h.bf16 %v530_v7 }
  0x1c   :  { %255 = vmatpush.bf16.msra.mxu0 %v727_v40  ;;  %810 = vmatpush.bf16.msra.mxu2 %v727_v40  ;;  %v556_v40 = vunpack.c.l.bf16 %v531_v31 }
  0x1d   :  { %304 = vmatpush.bf16.msra.mxu1 %v731_v41  ;;  %818 = vmatpush.bf16.msra.mxu3 %v731_v41 }
  0x20   :  { %256 = vmatpush.bf16.msra.mxu0 %v719_v46  ;;  %811 = vmatpush.bf16.msra.mxu2 %v719_v46 }
  0x21   :  { %305 = vmatpush.bf16.msra.mxu1 %v723_v47  ;;  %819 = vmatpush.bf16.msra.mxu3 %v723_v47 }
  0x23   :  { %257 = vmatmul.bf16.vlgmr.msra.gmra.mxu0 %v780_v48  ;;  %277 = vmatmul.bf16.vlgmr.msra.gmra.mxu2 %v784_v49 }
  0x24   :  { %306 = vmatmul.bf16.vlgmr.msra.gmra.mxu1 %v780_v48  ;;  %326 = vmatmul.bf16.vlgmr.msra.gmra.mxu3 %v784_v49  ;;  %v542_v48 = vunpack.c.l.bf16 %v524_v37 }
  0x33   :  { %262 = vmatmul.bf16.gmra.mxu0 %v781_v50  ;;  %282 = vmatmul.bf16.gmra.mxu2 %v785_v51 }
  0x34   :  { %311 = vmatmul.bf16.gmra.mxu1 %v781_v50  ;;  %331 = vmatmul.bf16.gmra.mxu3 %v785_v51 }
  0x43   :  { %267 = vmatmul.bf16.gmra.mxu0 %v782_v52  ;;  %287 = vmatmul.bf16.gmra.mxu2 %v786_v53 }
  0x44   :  { %316 = vmatmul.bf16.gmra.mxu1 %v782_v52  ;;  %336 = vmatmul.bf16.gmra.mxu3 %v786_v53  ;;  %v543_v52 = vunpack.c.h.bf16 %v524_v37 }
  0x53   :  { %272 = vmatmul.bf16.gmra.mxu0 %v783_v54  ;;  %292 = vmatmul.bf16.gmra.mxu2 %v787_v55 }
  0x54   :  { %321 = vmatmul.bf16.gmra.mxu1 %v783_v54  ;;  %341 = vmatmul.bf16.gmra.mxu3 %v787_v55 }
  0xa0   :  { %v258_v62 = vpop.f32.mrf.mxu0 }
  0xa1   :  { %v452_v0 = vmul.f32 %v1008_v58, %v258_v62  ;;  %v307_v2 = vpop.f32.mrf.mxu1 }
  0xa2   :  { %v453_v3 = vmul.f32 %v1013_v60, %v307_v2 }
  0xa3   :  { %v490_v5 = vadd.f32 %v1015_v61, %v452_v0 }
  0xa4   :  { %v491_v6 = vadd.f32 %v1017_v63, %v453_v3  ;;  %v525_v3 = vld [vmem:[%s1135_s4 + $0x18] sm:$0xff] }
  0xa5   :  { %v570_v8 = vadd.f32 %v538_v1, %v490_v5 }
  0xa6   :  { %v571_v9 = vadd.f32 %v539_v4, %v491_v6  ;;  %v278_v10 = vpop.f32.mrf.mxu2  ;;  %v558_v6 = vunpack.c.l.bf16 %v532_v57 }
  0xa7   :  { %v602_v12 = vmax.f32 %v570_v8, 0.0  ;;  %v468_v13 = vmul.f32 %v1008_v58, %v278_v10  ;;  %v327_v15 = vpop.f32.mrf.mxu3  ;;  %v559_v10 = vunpack.c.h.bf16 %v532_v57 }
  0xa8   :  { %v603_v16 = vmax.f32 %v571_v9, 0.0  ;;  %v469_v17 = vmul.f32 %v1013_v60, %v327_v15  ;;  %v260_v19 = vpop.f32.mrf.mxu0 }
  0xa9   :  { %634 = vst [vmem:[#allocation3] sm:$0xff] %v602_v12  ;;  %v506_v20 = vadd.f32 %v1015_v61, %v468_v13  ;;  %v454_v21 = vmul.f32 %v1008_v58, %v260_v19  ;;  %v309_v23 = vpop.f32.mrf.mxu1 }
  0xaa   :  { %635 = vst [vmem:[#allocation3 + $0x8] sm:$0xff] %v603_v16  ;;  %v507_v24 = vadd.f32 %v1017_v63, %v469_v17  ;;  %v455_v25 = vmul.f32 %v1013_v60, %v309_v23  ;;  %v533_v23 = vld [vmem:[%s1135_s4 + $0x58] sm:$0xff] }
  0xab   :  { %v586_v27 = vadd.f32 %v554_v14, %v506_v20  ;;  %v492_v28 = vadd.f32 %v1015_v61, %v454_v21  ;;  %v544_v14 = vunpack.c.l.bf16 %v525_v3 }
  0xac   :  { %v587_v29 = vadd.f32 %v555_v18, %v507_v24  ;;  %v493_v30 = vadd.f32 %v1017_v63, %v455_v25  ;;  %v545_v18 = vunpack.c.h.bf16 %v525_v3 }
  0xad   :  { %v618_v32 = vmax.f32 %v586_v27, 0.0  ;;  %v572_v33 = vadd.f32 %v540_v22, %v492_v28 }
  0xae   :  { %v619_v34 = vmax.f32 %v587_v29, 0.0  ;;  %v573_v35 = vadd.f32 %v541_v26, %v493_v30  ;;  %v280_v36 = vpop.f32.mrf.mxu2  ;;  %v526_v29 = vld [vmem:[%s1135_s4 + $0x20] sm:$0xff] }
  0xaf   :  { %650 = vst [vmem:[#allocation3 + $0x80] sm:$0xff] %v618_v32  ;;  %v604_v38 = vmax.f32 %v572_v33, 0.0  ;;  %v470_v39 = vmul.f32 %v1008_v58, %v280_v36  ;;  %v329_v41 = vpop.f32.mrf.mxu3  ;;  %v560_v32 = vunpack.c.l.bf16 %v533_v23  ;;  %v561_v36 = vunpack.c.h.bf16 %v533_v23 }
  0xb0   :  { %651 = vst [vmem:[#allocation3 + $0x88] sm:$0xff] %v619_v34  ;;  %v605_v42 = vmax.f32 %v573_v35, 0.0  ;;  %v471_v43 = vmul.f32 %v1013_v60, %v329_v41  ;;  %v263_v45 = vpop.f32.mrf.mxu0 }
  0xb1   :  { %636 = vst [vmem:[#allocation3 + $0x10] sm:$0xff] %v604_v38  ;;  %v508_v46 = vadd.f32 %v1015_v61, %v470_v39  ;;  %v456_v47 = vmul.f32 %v1008_v58, %v263_v45  ;;  %v312_v49 = vpop.f32.mrf.mxu1 }
  0xb2   :  { %637 = vst [vmem:[#allocation3 + $0x18] sm:$0xff] %v605_v42  ;;  %v509_v50 = vadd.f32 %v1017_v63, %v471_v43  ;;  %v457_v51 = vmul.f32 %v1013_v60, %v312_v49  ;;  %v534_v49 = vld [vmem:[%s1135_s4 + $0x60] sm:$0xff] }
  0xb3   :  { %v588_v53 = vadd.f32 %v556_v40, %v508_v46  ;;  %v494_v54 = vadd.f32 %v1015_v61, %v456_v47  ;;  %v546_v40 = vunpack.c.l.bf16 %v526_v29 }
  0xb4   :  { %v589_v55 = vadd.f32 %v557_v44, %v509_v50  ;;  %v495_v56 = vadd.f32 %v1017_v63, %v457_v51  ;;  %v547_v44 = vunpack.c.h.bf16 %v526_v29 }
  0xb5   :  { %v620_v59 = vmax.f32 %v588_v53, 0.0  ;;  %v574_v62 = vadd.f32 %v542_v48, %v494_v54 }
  0xb6   :  { %v621_v0 = vmax.f32 %v589_v55, 0.0  ;;  %v575_v1 = vadd.f32 %v543_v52, %v495_v56  ;;  %v283_v2 = vpop.f32.mrf.mxu2  ;;  %v527_v55 = vld [vmem:[%s1135_s4 + $0x28] sm:$0xff] }
  0xb7   :  { %652 = vst [vmem:[#allocation3 + $0x90] sm:$0xff] %v620_v59  ;;  %v606_v4 = vmax.f32 %v574_v62, 0.0  ;;  %v472_v5 = vmul.f32 %v1008_v58, %v283_v2  ;;  %v332_v7 = vpop.f32.mrf.mxu3  ;;  %v562_v59 = vunpack.c.l.bf16 %v534_v49  ;;  %v563_v2 = vunpack.c.h.bf16 %v534_v49 }
  0xb8   :  { %653 = vst [vmem:[#allocation3 + $0x98] sm:$0xff] %v621_v0  ;;  %v607_v8 = vmax.f32 %v575_v1, 0.0  ;;  %v473_v9 = vmul.f32 %v1013_v60, %v332_v7  ;;  %v265_v11 = vpop.f32.mrf.mxu0 }
  0xb9   :  { %638 = vst [vmem:[#allocation3 + $0x20] sm:$0xff] %v606_v4  ;;  %v510_v12 = vadd.f32 %v1015_v61, %v472_v5  ;;  %v458_v13 = vmul.f32 %v1008_v58, %v265_v11  ;;  %v314_v15 = vpop.f32.mrf.mxu1 }
  0xba   :  { %639 = vst [vmem:[#allocation3 + $0x28] sm:$0xff] %v607_v8  ;;  %v511_v16 = vadd.f32 %v1017_v63, %v473_v9  ;;  %v459_v17 = vmul.f32 %v1013_v60, %v314_v15  ;;  %v535_v15 = vld [vmem:[%s1135_s4 + $0x68] sm:$0xff] }
  0xbb   :  { %v590_v19 = vadd.f32 %v558_v6, %v510_v12  ;;  %v496_v20 = vadd.f32 %v1015_v61, %v458_v13  ;;  %v548_v6 = vunpack.c.l.bf16 %v527_v55 }
  0xbc   :  { %v591_v21 = vadd.f32 %v559_v10, %v511_v16  ;;  %v497_v22 = vadd.f32 %v1017_v63, %v459_v17  ;;  %v549_v10 = vunpack.c.h.bf16 %v527_v55 }
  0xbd   :  { %v622_v24 = vmax.f32 %v590_v19, 0.0  ;;  %v576_v25 = vadd.f32 %v544_v14, %v496_v20 }
  0xbe   :  { %v623_v26 = vmax.f32 %v591_v21, 0.0  ;;  %v577_v27 = vadd.f32 %v545_v18, %v497_v22  ;;  %v285_v28 = vpop.f32.mrf.mxu2  ;;  %v528_v21 = vld [vmem:[%s1135_s4 + $0x30] sm:$0xff] }
  0xbf   :  { %654 = vst [vmem:[#allocation3 + $0xa0] sm:$0xff] %v622_v24  ;;  %v608_v30 = vmax.f32 %v576_v25, 0.0  ;;  %v474_v31 = vmul.f32 %v1008_v58, %v285_v28  ;;  %v334_v33 = vpop.f32.mrf.mxu3  ;;  %v564_v24 = vunpack.c.l.bf16 %v535_v15  ;;  %v565_v28 = vunpack.c.h.bf16 %v535_v15 }
  0xc0   :  { %655 = vst [vmem:[#allocation3 + $0xa8] sm:$0xff] %v623_v26  ;;  %v609_v34 = vmax.f32 %v577_v27, 0.0  ;;  %v475_v35 = vmul.f32 %v1013_v60, %v334_v33  ;;  %v268_v37 = vpop.f32.mrf.mxu0 }
  0xc1   :  { %640 = vst [vmem:[#allocation3 + $0x30] sm:$0xff] %v608_v30  ;;  %v512_v38 = vadd.f32 %v1015_v61, %v474_v31  ;;  %v460_v39 = vmul.f32 %v1008_v58, %v268_v37  ;;  %v317_v41 = vpop.f32.mrf.mxu1 }
  0xc2   :  { %641 = vst [vmem:[#allocation3 + $0x38] sm:$0xff] %v609_v34  ;;  %v513_v42 = vadd.f32 %v1017_v63, %v475_v35  ;;  %v461_v43 = vmul.f32 %v1013_v60, %v317_v41  ;;  %v536_v41 = vld [vmem:[%s1135_s4 + $0x70] sm:$0xff] }
  0xc3   :  { %v592_v45 = vadd.f32 %v560_v32, %v512_v38  ;;  %v498_v46 = vadd.f32 %v1015_v61, %v460_v39  ;;  %v550_v32 = vunpack.c.l.bf16 %v528_v21 }
  0xc4   :  { %v593_v47 = vadd.f32 %v561_v36, %v513_v42  ;;  %v499_v48 = vadd.f32 %v1017_v63, %v461_v43  ;;  %v551_v36 = vunpack.c.h.bf16 %v528_v21 }
  0xc5   :  { %v624_v50 = vmax.f32 %v592_v45, 0.0  ;;  %v578_v51 = vadd.f32 %v546_v40, %v498_v46 }
  0xc6   :  { %v625_v52 = vmax.f32 %v593_v47, 0.0  ;;  %v579_v53 = vadd.f32 %v547_v44, %v499_v48  ;;  %v288_v54 = vpop.f32.mrf.mxu2  ;;  %v529_v47 = vld [vmem:[%s1135_s4 + $0x38] sm:$0xff] }
  0xc7   :  { %656 = vst [vmem:[#allocation3 + $0xb0] sm:$0xff] %v624_v50  ;;  %v610_v56 = vmax.f32 %v578_v51, 0.0  ;;  %v476_v57 = vmul.f32 %v1008_v58, %v288_v54  ;;  %v337_v62 = vpop.f32.mrf.mxu3  ;;  %v566_v50 = vunpack.c.l.bf16 %v536_v41  ;;  %v567_v54 = vunpack.c.h.bf16 %v536_v41 }
  0xc8   :  { %657 = vst [vmem:[#allocation3 + $0xb8] sm:$0xff] %v625_v52  ;;  %v611_v0 = vmax.f32 %v579_v53, 0.0  ;;  %v477_v1 = vmul.f32 %v1013_v60, %v337_v62  ;;  %v270_v3 = vpop.f32.mrf.mxu0 }
  0xc9   :  { %642 = vst [vmem:[#allocation3 + $0x40] sm:$0xff] %v610_v56  ;;  %v514_v4 = vadd.f32 %v1015_v61, %v476_v57  ;;  %v462_v5 = vmul.f32 %v1008_v58, %v270_v3  ;;  %v319_v7 = vpop.f32.mrf.mxu1 }
  0xca   :  { %643 = vst [vmem:[#allocation3 + $0x48] sm:$0xff] %v611_v0  ;;  %v515_v8 = vadd.f32 %v1017_v63, %v477_v1  ;;  %v463_v9 = vmul.f32 %v1013_v60, %v319_v7  ;;  %v537_v7 = vld [vmem:[%s1135_s4 + $0x78] sm:$0xff]  ;;  %s849_s4 = smov [#allocation3]  }
  0xcb   :  { %v594_v11 = vadd.f32 %v562_v59, %v514_v4  ;;  %v500_v12 = vadd.f32 %v1015_v61, %v462_v5  ;;  %v552_v59 = vunpack.c.l.bf16 %v529_v47  ;;  %v568_v15 = vunpack.c.l.bf16 %v537_v7  ;;  %s670_s2 = sshll.u32 %s849_s4, 4  ;;  %s671_s2 = int_to_ptr.vmem [resolvable:$true] %s670_s2 }
  0xcc   :  { %v595_v13 = vadd.f32 %v563_v2, %v515_v8  ;;  %v501_v14 = vadd.f32 %v1017_v63, %v463_v9  ;;  %v553_v2 = vunpack.c.h.bf16 %v529_v47 }
  0xcd   :  { %v626_v16 = vmax.f32 %v594_v11, 0.0  ;;  %v580_v17 = vadd.f32 %v548_v6, %v500_v12 }
  0xce   :  { %v627_v18 = vmax.f32 %v595_v13, 0.0  ;;  %v581_v19 = vadd.f32 %v549_v10, %v501_v14  ;;  %v290_v20 = vpop.f32.mrf.mxu2 }
  0xcf   :  { %658 = vst [vmem:[#allocation3 + $0xc0] sm:$0xff] %v626_v16  ;;  %v612_v22 = vmax.f32 %v580_v17, 0.0  ;;  %v478_v23 = vmul.f32 %v1008_v58, %v290_v20  ;;  %v339_v25 = vpop.f32.mrf.mxu3 }
  0xd0   :  { %659 = vst [vmem:[#allocation3 + $0xc8] sm:$0xff] %v627_v18  ;;  %v613_v26 = vmax.f32 %v581_v19, 0.0  ;;  %v479_v27 = vmul.f32 %v1013_v60, %v339_v25  ;;  %v273_v29 = vpop.f32.mrf.mxu0  ;;  %v569_v19 = vunpack.c.h.bf16 %v537_v7 }
  0xd1   :  { %644 = vst [vmem:[#allocation3 + $0x50] sm:$0xff] %v612_v22  ;;  %v516_v30 = vadd.f32 %v1015_v61, %v478_v23  ;;  %v464_v31 = vmul.f32 %v1008_v58, %v273_v29  ;;  %v322_v33 = vpop.f32.mrf.mxu1 }
  0xd2   :  { %645 = vst [vmem:[#allocation3 + $0x58] sm:$0xff] %v613_v26  ;;  %v517_v34 = vadd.f32 %v1017_v63, %v479_v27  ;;  %v465_v35 = vmul.f32 %v1013_v60, %v322_v33 }
  0xd3   :  { %v596_v37 = vadd.f32 %v564_v24, %v516_v30  ;;  %v502_v38 = vadd.f32 %v1015_v61, %v464_v31 }
  0xd4   :  { %v597_v39 = vadd.f32 %v565_v28, %v517_v34  ;;  %v503_v40 = vadd.f32 %v1017_v63, %v465_v35 }
  0xd5   :  { %v628_v42 = vmax.f32 %v596_v37, 0.0  ;;  %v582_v43 = vadd.f32 %v550_v32, %v502_v38 }
  0xd6   :  { %v629_v44 = vmax.f32 %v597_v39, 0.0  ;;  %v583_v45 = vadd.f32 %v551_v36, %v503_v40  ;;  %v293_v46 = vpop.f32.mrf.mxu2 }
  0xd7   :  { %660 = vst [vmem:[#allocation3 + $0xd0] sm:$0xff] %v628_v42  ;;  %v614_v48 = vmax.f32 %v582_v43, 0.0  ;;  %v480_v49 = vmul.f32 %v1008_v58, %v293_v46  ;;  %v342_v51 = vpop.f32.mrf.mxu3 }
  0xd8   :  { %661 = vst [vmem:[#allocation3 + $0xd8] sm:$0xff] %v629_v44  ;;  %v615_v52 = vmax.f32 %v583_v45, 0.0  ;;  %v481_v53 = vmul.f32 %v1013_v60, %v342_v51  ;;  %v275_v55 = vpop.f32.mrf.mxu0 }
  0xd9   :  { %646 = vst [vmem:[#allocation3 + $0x60] sm:$0xff] %v614_v48  ;;  %v518_v56 = vadd.f32 %v1015_v61, %v480_v49  ;;  %v466_v57 = vmul.f32 %v1008_v58, %v275_v55  ;;  %v324_v62 = vpop.f32.mrf.mxu1 }
  0xda   :  { %647 = vst [vmem:[#allocation3 + $0x68] sm:$0xff] %v615_v52  ;;  %v519_v0 = vadd.f32 %v1017_v63, %v481_v53  ;;  %v467_v1 = vmul.f32 %v1013_v60, %v324_v62 }
  0xdb   :  { %v598_v3 = vadd.f32 %v566_v50, %v518_v56  ;;  %v504_v4 = vadd.f32 %v1015_v61, %v466_v57 }
  0xdc   :  { %v599_v5 = vadd.f32 %v567_v54, %v519_v0  ;;  %v505_v6 = vadd.f32 %v1017_v63, %v467_v1 }
  0xdd   :  { %v630_v8 = vmax.f32 %v598_v3, 0.0  ;;  %v584_v9 = vadd.f32 %v552_v59, %v504_v4 }
  0xde   :  { %v631_v10 = vmax.f32 %v599_v5, 0.0  ;;  %v585_v11 = vadd.f32 %v553_v2, %v505_v6  ;;  %v295_v12 = vpop.f32.mrf.mxu2 }
  0xdf   :  { %662 = vst [vmem:[#allocation3 + $0xe0] sm:$0xff] %v630_v8  ;;  %v616_v13 = vmax.f32 %v584_v9, 0.0  ;;  %v482_v14 = vmul.f32 %v1008_v58, %v295_v12  ;;  %v344_v16 = vpop.f32.mrf.mxu3 }
  0xe0   :  { %663 = vst [vmem:[#allocation3 + $0xe8] sm:$0xff] %v631_v10  ;;  %v617_v17 = vmax.f32 %v585_v11, 0.0  ;;  %v483_v18 = vmul.f32 %v1013_v60, %v344_v16 }
  0xe1   :  { %648 = vst [vmem:[#allocation3 + $0x70] sm:$0xff] %v616_v13  ;;  %v520_v20 = vadd.f32 %v1015_v61, %v482_v14 }
  0xe2   :  { %649 = vst [vmem:[#allocation3 + $0x78] sm:$0xff] %v617_v17  ;;  %v521_v21 = vadd.f32 %v1017_v63, %v483_v18 }
  0xe3   :  { %v600_v58 = vadd.f32 %v568_v15, %v520_v20 }
  0xe4   :  { %v601_v22 = vadd.f32 %v569_v19, %v521_v21 }
  0xe5   :  { %v632_v23 = vmax.f32 %v600_v58, 0.0 }
  0xe6   :  { %v633_v24 = vmax.f32 %v601_v22, 0.0 }
  0xe7   :  { %664 = vst [vmem:[#allocation3 + $0xf0] sm:$0xff] %v632_v23 }
  0xe8   :  { %665 = vst [vmem:[#allocation3 + $0xf8] sm:$0xff] %v633_v24 }
  0xe9   :  { %678 = dma.vmem_to_hbm [thread:$0]  %s671_s2, 4096, %s673_s29, [#allocation4], %s850_s30, %s850_s30, %s851_s6  }
  0xea   :  { %847 = dma.done.wait [#allocation4], 4096  }
  0xeb   :  { %848 = vsyncadd [#allocation4], 4294963200 }
  0xec   :  { %683 = vsyncpa [#allocation4], 1 }

// kernel: bottleneck_forward.5
= control target key start
LH: loop header
LB: loop body
LE: loop exit
PB: predicated region body
PF: predicated region fallthrough
CT: control target
= control target key end

     0   :  { %s3038_s15 = smov 0   ;;  %s3040_s16 = smov 0   ;;  %s3531_s0 = inlined_call_operand.vmem [shape: bf16[2,102,128], index: 0, kind: input, shape index: {}]   ;;  %s3532_s1 = inlined_call_operand.vmem [shape: bf16[9,128,128], index: 1, kind: input, shape index: {}]   ;;  %s3533_s2 = inlined_call_operand.vmem [shape: f32[1,128], index: 2, kind: input, shape index: {}]   ;;  %s3534_s3 = inlined_call_operand.vmem [shape: f32[1,128], index: 3, kind: input, shape index: {}]   ;;  %s3535_s4 = inlined_call_operand.vmem [shape: bf16[2,80,128], index: 4, kind: output, shape index: {}]  }
   0x1   :  { %s3042_s17 = smov 0  }
   0x2 LB: > { %s26_s18 = sadd.s32 1, %s3007_s16  ;;  %p2198_p0 = scmp.ge.s32.totalorder %s3011_s17, 1  ;;  %s3011_s17 = sphi %s3042_s17, %s14_s17   ;;  %s3007_s16 = sphi %s3040_s16, %s3537_s16   ;;  %s3003_s15 = sphi %s3038_s15, %s3536_s15  }
   0x3   : > { %p28_p1 = scmp.ge.s32.totalorder %s26_s18, 2  ;;  %p201_p2 = scmp.lt.s32.totalorder %s3011_s17, 3 }
   0x5   : > { %s3539_s18 = smov (%p28_p1, %s26_s18), 0  ;;  %p202_p3 = pnand %p2198_p0, %p201_p2 }
   0x6   : > { %p240_p4 = scmp.lt.s32.totalorder (!%p202_p3), %s3003_s15, 1 }
   0x7   : > { %205 = sbr.rel (%p202_p3) target bundleno = 378 (0x17a), region = 36 }
   0xc   : > { %v2811_v0 = vld [vmem:[%s3532_s1 + $0x38] sm:$0xff]  ;;  %v2810_v1 = vld [vmem:[%s3532_s1 + $0x30] sm:$0xff]  ;;  %v2809_v4 = vld [vmem:[%s3532_s1 + $0x28] sm:$0xff]  ;;  %s3541_s15 = smov (!%p240_p4, %s3003_s15), 1  ;;  %vm685_vm0 = vcmask 1046528   ;;  %vm1281_vm4 = vcmask 1045504  }
   0xd   : > { %367 = vmatpush.bf16.msra.mxu0 %v2811_v0  ;;  %2945 = vmatpush.bf16.msra.mxu1 %v2811_v0  ;;  %v2850_v2 = vld [vmem:[%s3532_s1 + $0xf8] sm:$0xff]  ;;  %v2849_v3 = vld [vmem:[%s3532_s1 + $0xf0] sm:$0xff]  ;;  %v2848_v5 = vld [vmem:[%s3532_s1 + $0xe8] sm:$0xff]  ;;  %s2961_s19 = smul.u32 52, %s3541_s15  ;;  %vm467_vm1 = vsmask.f32 7424 }
   0xe   : > { %2946 = vmatpush.bf16.msra.mxu2 %v2811_v0  ;;  %934 = vmatpush.bf16.msra.mxu3 %v2850_v2  ;;  %v2808_v6 = vld [vmem:[%s3532_s1 + $0x20] sm:$0xff]  ;;  %v2807_v8 = vld [vmem:[%s3532_s1 + $0x18] sm:$0xff]  ;;  %v2806_v10 = vld [vmem:[%s3532_s1 + $0x10] sm:$0xff]  ;;  %vm1054_vm2 = vsmask.f32 6400  ;;  %vm1877_vm5 = vcmask 1044480  }
   0xf   : > { %v2847_v7 = vld [vmem:[%s3532_s1 + $0xe0] sm:$0xff]  ;;  %v2846_v9 = vld [vmem:[%s3532_s1 + $0xd8] sm:$0xff]  ;;  %v2845_v11 = vld [vmem:[%s3532_s1 + $0xd0] sm:$0xff]  ;;  %s3105_s26 = scalar_lea.vmem %s3531_s0, %s2961_s19  ;;  %vm1650_vm3 = vsmask.f32 5376  ;;  %s2962_s21 = smul.u32 40, %s3541_s15 }
  0x10   : > { %v2805_v12 = vld [vmem:[%s3532_s1 + $0x8] sm:$0xff]  ;;  %v2407_v13 = vld [vmem:[%s3105_s26 + $0x4] sm:$0xe]  ;;  %v2824_v19 = vld [vmem:[%s3532_s1 + $0x78] sm:$0xff] }
  0x11   : > { %368 = vmatpush.bf16.msra.mxu0 %v2810_v1  ;;  %2947 = vmatpush.bf16.msra.mxu1 %v2810_v1  ;;  %v2838_v14 = vld [vmem:[%s3105_s26 + $0x4] sm:$0xf0]  ;;  %v2804_v16 = vld [vmem:[%s3532_s1] sm:$0xff]  ;;  %v3116_v17 = vld [vmem:[%s3105_s26 + $0xc] sm:$0xff]  ;;  %s3492_s24 = scalar_lea.vmem %s3535_s4, %s2962_s21 }
  0x12   : > { %2948 = vmatpush.bf16.msra.mxu2 %v2810_v1  ;;  %935 = vmatpush.bf16.msra.mxu3 %v2849_v3  ;;  %v2844_v15 = vld [vmem:[%s3532_s1 + $0xc8] sm:$0xff]  ;;  %v2408_v18 = vor.u32 %v2838_v14, %v2407_v13  ;;  %v2837_v20 = vld [vmem:[%s3532_s1 + $0xb8] sm:$0xff]  ;;  %v2799_v22 = vld [vmem:[%s3105_s26] sm:$0xff]  ;;  %v871_v27 = vrot.slane %v3116_v17, 1 }
  0x13   : > { %v2863_v21 = vld [vmem:[%s3532_s1 + $0x138] sm:$0xff]  ;;  %v2801_v23 = vld [vmem:[%s3105_s26 + $0x10] sm:$0xff]  ;;  %v2803_v24 = vld [vmem:[%s3105_s26 + $0x20] sm:$0xff] }
  0x14   : > { %v2843_v25 = vld [vmem:[%s3532_s1 + $0xc0] sm:$0xff]  ;;  %v870_v26 = vrot.slane %v2408_v18, 1  ;;  %v2823_v28 = vld [vmem:[%s3532_s1 + $0x70] sm:$0xff]  ;;  %v2902_v29 = vld [vmem:[%s3532_s1 + $0x1f8] sm:$0xff] }
  0x15   : > { %369 = vmatpush.bf16.msra.mxu0 %v2809_v4  ;;  %2949 = vmatpush.bf16.msra.mxu1 %v2809_v4  ;;  %v2836_v30 = vld [vmem:[%s3532_s1 + $0xb0] sm:$0xff]  ;;  %v2822_v33 = vld [vmem:[%s3532_s1 + $0x68] sm:$0xff]  ;;  %v2821_v37 = vld [vmem:[%s3532_s1 + $0x60] sm:$0xff] }
  0x16   : > { %2950 = vmatpush.bf16.msra.mxu2 %v2809_v4  ;;  %936 = vmatpush.bf16.msra.mxu3 %v2848_v5  ;;  %v2862_v31 = vld [vmem:[%s3532_s1 + $0x130] sm:$0xff]  ;;  %v872_v32 = vsel %vm685_vm0, %v870_v26, %v871_v27  ;;  %v2835_v35 = vld [vmem:[%s3532_s1 + $0xa8] sm:$0xff]  ;;  %v2834_v38 = vld [vmem:[%s3532_s1 + $0xa0] sm:$0xff] }
  0x17   : > { %v2901_v34 = vld [vmem:[%s3532_s1 + $0x1f0] sm:$0xff]  ;;  %v2861_v36 = vld [vmem:[%s3532_s1 + $0x128] sm:$0xff]  ;;  %v2860_v39 = vld [vmem:[%s3532_s1 + $0x120] sm:$0xff] }
  0x18   : > { %v2475_v40 = vld [vmem:[%s3105_s26 + $0x4] sm:$0xe]  ;;  %v2851_v41 = vld [vmem:[%s3105_s26 + $0x4] sm:$0xf0]  ;;  %v3173_v42 = vld [vmem:[%s3105_s26 + $0x14] sm:$0xff] }
  0x19   : > { %370 = vmatpush.bf16.msra.mxu0 %v2808_v6  ;;  %2951 = vmatpush.bf16.msra.mxu1 %v2808_v6  ;;  %v2820_v43 = vld [vmem:[%s3532_s1 + $0x58] sm:$0xff]  ;;  %v2800_v46 = vld [vmem:[%s3105_s26 + $0x8] sm:$0xff]  ;;  %v2812_v48 = vld [vmem:[%s3105_s26] sm:$0xff]  ;;  %v2476_v49 = vor.u32 %v2851_v41, %v2475_v40  ;;  %v873_v51 = vrot.slane %v3173_v42, 1 }
  0x1a   : > { %2952 = vmatpush.bf16.msra.mxu2 %v2808_v6  ;;  %937 = vmatpush.bf16.msra.mxu3 %v2847_v7  ;;  %v2833_v44 = vld [vmem:[%s3532_s1 + $0x98] sm:$0xff]  ;;  %v2852_v50 = vld [vmem:[%s3105_s26 + $0xc] sm:$0xff]  ;;  %v2339_v55 = vld [vmem:[%s3105_s26] sm:$0xe]  ;;  %v471_v58 = vshll.u32 %v2812_v48, 16  ;;  %v469_v6 = vshrl.u32 %v2812_v48, 16 }
  0x1b   : > { %v2859_v45 = vld [vmem:[%s3532_s1 + $0x118] sm:$0xff]  ;;  %v2819_v52 = vld [vmem:[%s3532_s1 + $0x50] sm:$0xff]  ;;  %v2825_v56 = vld [vmem:[%s3105_s26] sm:$0xf0]  ;;  %v1056_v59 = vshrl.u32 %v2476_v49, 16  ;;  %v1059_v61 = vshll.u32 %v2476_v49, 16  ;;  %v874_v0 = vsel %vm685_vm0, %v871_v27, %v873_v51 }
  0x1c   : > { %v2802_v47 = vld [vmem:[%s3105_s26 + $0x18] sm:$0xff]  ;;  %v2832_v53 = vld [vmem:[%s3532_s1 + $0x90] sm:$0xff]  ;;  %v3201_v57 = vld [vmem:[%s3105_s26 + $0x8] sm:$0xff]  ;;  %v1064_v62 = vshrl.u32 %v2852_v50, 16  ;;  %v1067_v63 = vshll.u32 %v2852_v50, 16  ;;  %v2340_v5 = vor.u32 %v2825_v56, %v2339_v55  ;;  %v473_v7 = vrot.slane %v471_v58, 1 }
  0x1d   : > { %371 = vmatpush.bf16.msra.mxu0 %v2807_v8  ;;  %2953 = vmatpush.bf16.msra.mxu1 %v2807_v8  ;;  %v2858_v54 = vld [vmem:[%s3532_s1 + $0x110] sm:$0xff]  ;;  %v2900_v60 = vld [vmem:[%s3532_s1 + $0x1e8] sm:$0xff]  ;;  %v2817_v13 = vld [vmem:[%s3532_s1 + $0x40] sm:$0xff] }
  0x1e   : > { %2954 = vmatpush.bf16.msra.mxu2 %v2807_v8  ;;  %938 = vmatpush.bf16.msra.mxu3 %v2846_v9  ;;  %v2818_v1 = vld [vmem:[%s3532_s1 + $0x48] sm:$0xff]  ;;  %v476_v8 = vshll.u32 %v3201_v57, 16  ;;  %v1058_v9 = vrot.slane %v1056_v59, 1  ;;  %v2830_v14 = vld [vmem:[%s3532_s1 + $0x80] sm:$0xff]  ;;  %v2889_v18 = vld [vmem:[%s3532_s1 + $0x1b8] sm:$0xff] }
  0x1f   : > { %v2831_v2 = vld [vmem:[%s3532_s1 + $0x88] sm:$0xff]  ;;  %v2856_v17 = vld [vmem:[%s3532_s1 + $0x100] sm:$0xff]  ;;  %v2885_v55 = vld [vmem:[%s3532_s1 + $0x198] sm:$0xff] }
  0x20   : > { %v2857_v3 = vld [vmem:[%s3532_s1 + $0x108] sm:$0xff]  ;;  %v2886_v48 = vld [vmem:[%s3532_s1 + $0x1a0] sm:$0xff] }
  0x21   : > { %372 = vmatpush.bf16.msra.mxu0 %v2806_v10  ;;  %2955 = vmatpush.bf16.msra.mxu1 %v2806_v10  ;;  %v3221_v4 = vld [vmem:[%s3105_s26 + $0x8] sm:$0xff]  ;;  %v2873_v49 = vld [vmem:[%s3532_s1 + $0x160] sm:$0xff] }
  0x22   : > { %2956 = vmatpush.bf16.msra.mxu2 %v2806_v10  ;;  %939 = vmatpush.bf16.msra.mxu3 %v2845_v11  ;;  %v1061_v10 = vrot.slane %v1059_v61, 2  ;;  %v1066_v11 = vrot.slane %v1064_v62, 1  ;;  %v2913_v41 = vld [vmem:[%s3532_s1 + $0x228] sm:$0xff]  ;;  %v2912_v50 = vld [vmem:[%s3532_s1 + $0x220] sm:$0xff] }
  0x23   : > { %v3302_v56 = vld [vmem:[%s3105_s26 + $0x24] sm:$0xff]  ;;  %v2854_v61 = vld [vmem:[%s3105_s26 + $0x1c] sm:$0xff] }
  0x24   : > { %v877_v62 = vrot.slane %v3302_v56, 1 }
  0x25   : > { %373 = vmatpush.bf16.msra.mxu0 %v2805_v12  ;;  %2957 = vmatpush.bf16.msra.mxu1 %v2805_v12 }
  0x26   : > { %2958 = vmatpush.bf16.msra.mxu2 %v2805_v12  ;;  %940 = vmatpush.bf16.msra.mxu3 %v2844_v15  ;;  %v1069_v12 = vrot.slane %v1067_v63, 2  ;;  %v686_v15 = vrot.slane %v2340_v5, 1  ;;  %v2884_v63 = vld [vmem:[%s3532_s1 + $0x190] sm:$0xff]  ;;  %v1085_v5 = vshll.u32 %v2854_v61, 16 }
  0x29   : > { %374 = vmatpush.bf16.msra.mxu0 %v2804_v16  ;;  %2959 = vmatpush.bf16.msra.mxu1 %v2804_v16 }
  0x2a   : > { %2960 = vmatpush.bf16.msra.mxu2 %v2804_v16  ;;  %941 = vmatpush.bf16.msra.mxu3 %v2843_v25  ;;  %v687_v16 = vrot.slane %v3221_v4, 1  ;;  %v3244_v25 = vld [vmem:[%s3105_s26 + $0x1c] sm:$0xff]  ;;  %v1082_v4 = vshrl.u32 %v2854_v61, 16 }
  0x2c   : > { %375 = vmatmul.bf16.vlgmr.msra.gmra.mxu0 %v2799_v22  ;;  %385 = vmatmul.bf16.vlgmr.msra.gmra.mxu1 %v2801_v23  ;;  %v1062_v22 = vor.u32 %v1061_v10, %v1058_v9  ;;  %v1070_v23 = vor.u32 %v1069_v12, %v1066_v11  ;;  %v688_v26 = vsel %vm685_vm0, %v686_v15, %v687_v16  ;;  %v824_v9 = vld [vmem:[%s3105_s26 + $0x2c] sm:$0x1]  ;;  %v3341_v11 = vld [vmem:[%s3105_s26 + $0x18] sm:$0xff]  ;;  %v1087_v15 = vrot.slane %v1085_v5, 2 }
  0x2d   : > { %565 = vmatpush.bf16.msrb.mxu1 %v2824_v19  ;;  %1161 = vmatpush.bf16.msrb.mxu0 %v2863_v21  ;;  %v2876_v19 = vld [vmem:[%s3532_s1 + $0x178] sm:$0xff]  ;;  %v478_v21 = vrot.slane %v476_v8, 1  ;;  %v2910_v8 = vld [vmem:[%s3532_s1 + $0x210] sm:$0xff]  ;;  %v2896_v10 = vld [vmem:[%s3532_s1 + $0x1c8] sm:$0xff] }
  0x2e   : > { %750 = vmatpush.bf16.msrb.mxu2 %v2837_v20  ;;  %1757 = vmatpush.bf16.msrb.mxu3 %v2902_v29  ;;  %v474_v20 = vor.u32 %v473_v7, %v469_v6  ;;  %v2888_v29 = vld [vmem:[%s3532_s1 + $0x1b0] sm:$0xff]  ;;  %v2883_v7 = vld [vmem:[%s3532_s1 + $0x188] sm:$0xff] }
  0x2f   : > { %395 = vmatmul.bf16.vlgmr.msra.gmra.mxu2 %v2803_v24  ;;  %942 = vmatmul.bf16.vlgmr.msra.gmra.mxu3 %v872_v32  ;;  %v2915_v24 = vld [vmem:[%s3532_s1 + $0x238] sm:$0xff]  ;;  %v875_v32 = vrot.slane %v3244_v25, 1 }
  0x30   : > { %v479_v27 = vsel %vm467_vm1, %v474_v20, %v478_v21 }
  0x31   : > { %566 = vmatpush.bf16.msrb.mxu1 %v2823_v28  ;;  %1162 = vmatpush.bf16.msrb.mxu0 %v2862_v31  ;;  %v1071_v28 = vsel %vm1054_vm2, %v1062_v22, %v1070_v23  ;;  %v2853_v31 = vld [vmem:[%s3105_s26 + $0x14] sm:$0xff]  ;;  %v876_v40 = vsel %vm685_vm0, %v873_v51, %v875_v32  ;;  %v878_v6 = vsel %vm685_vm0, %v875_v32, %v877_v62 }
  0x32   : > { %751 = vmatpush.bf16.msrb.mxu2 %v2836_v30  ;;  %1758 = vmatpush.bf16.msrb.mxu3 %v2901_v34  ;;  %v2875_v30 = vld [vmem:[%s3532_s1 + $0x170] sm:$0xff]  ;;  %v2899_v34 = vld [vmem:[%s3532_s1 + $0x1e0] sm:$0xff] }
  0x35   : > { %567 = vmatpush.bf16.msrb.mxu1 %v2822_v33  ;;  %1163 = vmatpush.bf16.msrb.mxu0 %v2861_v36  ;;  %v2914_v33 = vld [vmem:[%s3532_s1 + $0x230] sm:$0xff]  ;;  %v1073_v36 = vshrl.u32 %v2853_v31, 16 }
  0x36   : > { %752 = vmatpush.bf16.msrb.mxu2 %v2835_v35  ;;  %1759 = vmatpush.bf16.msrb.mxu3 %v2900_v60  ;;  %v3266_v35 = vld [vmem:[%s3105_s26 + $0x10] sm:$0xff] }
  0x37   : > { %v1075_v42 = vrot.slane %v1073_v36, 1  ;;  %v488_v12 = vshrl.u32 %v3266_v35, 16 }
  0x39   : > { %568 = vmatpush.bf16.msrb.mxu1 %v2821_v37  ;;  %1164 = vmatpush.bf16.msrb.mxu0 %v2860_v39  ;;  %v1076_v37 = vshll.u32 %v2853_v31, 16  ;;  %v2874_v39 = vld [vmem:[%s3532_s1 + $0x168] sm:$0xff] }
  0x3a   : > { %753 = vmatpush.bf16.msrb.mxu2 %v2834_v38  ;;  %v2887_v38 = vld [vmem:[%s3532_s1 + $0x1a8] sm:$0xff]  ;;  %1760 = vmatpush.bf16.msrb.mxu3 %v2899_v34 }
  0x3b   : > { %v2909_v34 = vld [vmem:[%s3532_s1 + $0x208] sm:$0xff] }
  0x3c   : > { %380 = vmatmul.bf16.gmra.mxu0 %v2800_v46  ;;  %390 = vmatmul.bf16.gmra.mxu1 %v2802_v47  ;;  %v484_v46 = vshll.u32 %v3266_v35, 16  ;;  %v1078_v47 = vrot.slane %v1076_v37, 2  ;;  %v2895_v35 = vld [vmem:[%s3532_s1 + $0x1c0] sm:$0xff] }
  0x3d   : > { %569 = vmatpush.bf16.msrb.mxu1 %v2820_v43  ;;  %1165 = vmatpush.bf16.msrb.mxu0 %v2859_v45  ;;  %v2898_v43 = vld [vmem:[%s3532_s1 + $0x1d8] sm:$0xff]  ;;  %v480_v45 = vshrl.u32 %v3201_v57, 16  ;;  %v2869_v37 = vld [vmem:[%s3532_s1 + $0x140] sm:$0xff] }
  0x3e   : > { %754 = vmatpush.bf16.msrb.mxu2 %v2833_v44  ;;  %v3284_v44 = vld [vmem:[%s3105_s26 + $0x10] sm:$0xff]  ;;  %1761 = vmatpush.bf16.msrb.mxu3 %v2898_v43  ;;  %v2872_v57 = vld [vmem:[%s3532_s1 + $0x158] sm:$0xff] }
  0x3f   : > { %947 = vmatmul.bf16.gmra.mxu3 %v874_v0  ;;  %v689_v51 = vrot.slane %v3284_v44, 1  ;;  %v2911_v0 = vld [vmem:[%s3532_s1 + $0x218] sm:$0xff] }
  0x41   : > { %570 = vmatpush.bf16.msrb.mxu1 %v2819_v52  ;;  %1166 = vmatpush.bf16.msrb.mxu0 %v2858_v54  ;;  %v482_v52 = vor.u32 %v480_v45, %v478_v21  ;;  %v1079_v54 = vor.u32 %v1078_v47, %v1075_v42  ;;  %v690_v58 = vsel %vm685_vm0, %v687_v16, %v689_v51  ;;  %v863_v16 = vunpack.c.l.b16 %v824_v9 }
  0x42   : > { %755 = vmatpush.bf16.msrb.mxu2 %v2832_v53  ;;  %v486_v53 = vrot.slane %v484_v46, 1  ;;  %v1008_v46 = vld [vmem:[%s3105_s26 + $0x2c] sm:$0x3] }
  0x43   : > { %v1080_v60 = vsel %vm1054_vm2, %v1070_v23, %v1079_v54  ;;  %v869_v21 = vpack.c.b16 %v863_v16, %v863_v16  ;;  %v2855_v23 = vld [vmem:[%s3105_s26 + $0x24] sm:$0xff] }
  0x44   : > { %v487_v59 = vsel %vm467_vm1, %v482_v52, %v486_v53  ;;  %v1091_v31 = vshrl.u32 %v2855_v23, 16  ;;  %v1094_v32 = vshll.u32 %v2855_v23, 16 }
  0x45   : > { %571 = vmatpush.bf16.msrb.mxu1 %v2818_v1  ;;  %1167 = vmatpush.bf16.msrb.mxu0 %v2857_v3  ;;  %v2897_v1 = vld [vmem:[%s3532_s1 + $0x1d0] sm:$0xff]  ;;  %v3327_v3 = vld [vmem:[%s3105_s26 + $0x18] sm:$0xff] }
  0x46   : > { %756 = vmatpush.bf16.msrb.mxu2 %v2831_v2  ;;  %v2871_v2 = vld [vmem:[%s3532_s1 + $0x150] sm:$0xff]  ;;  %1762 = vmatpush.bf16.msrb.mxu3 %v2897_v1  ;;  %v1093_v44 = vrot.slane %v1091_v31, 1  ;;  %v1096_v45 = vrot.slane %v1094_v32, 2  ;;  %v2864_v31 = vld [vmem:[%s3105_s26 + $0x4] sm:$0xf0] }
  0x49   : > { %572 = vmatpush.bf16.msrb.mxu1 %v2817_v13  ;;  %1168 = vmatpush.bf16.msrb.mxu0 %v2856_v17  ;;  %v492_v13 = vshll.u32 %v3327_v3, 16  ;;  %v691_v17 = vrot.slane %v3341_v11, 1 }
  0x4a   : > { %757 = vmatpush.bf16.msrb.mxu2 %v2830_v14  ;;  %v1084_v14 = vrot.slane %v1082_v4, 1  ;;  %1763 = vmatpush.bf16.msrb.mxu3 %v2896_v10  ;;  %v2892_v10 = vld [vmem:[%s3105_s26 + $0x18] sm:$0xff] }
  0x4b   : > { %v692_v22 = vsel %vm685_vm0, %v689_v51, %v691_v17  ;;  %v1669_v16 = vshrl.u32 %v2892_v10, 16 }
  0x4c   : > { %573 = vmatmul.bf16.vlgmr.msrb.gmra.mxu1 %v479_v27  ;;  %1169 = vmatmul.bf16.vlgmr.msrb.gmra.mxu0 %v1071_v28  ;;  %v1088_v20 = vor.u32 %v1087_v15, %v1084_v14  ;;  %v2870_v27 = vld [vmem:[%s3532_s1 + $0x148] sm:$0xff] }
  0x4d   : > { %1346 = vmatpush.bf16.msra.mxu1 %v2876_v19  ;;  %1942 = vmatpush.bf16.msra.mxu0 %v2915_v24  ;;  %v494_v19 = vrot.slane %v492_v13, 1  ;;  %v2679_v28 = vld [vmem:[%s3105_s26 + $0x8] sm:$0xc] }
  0x4e   : > { %1530 = vmatpush.bf16.msra.mxu2 %v2889_v18  ;;  %v490_v18 = vor.u32 %v488_v12, %v486_v53  ;;  %v1089_v25 = vsel %vm1054_vm2, %v1079_v54, %v1088_v20  ;;  %1764 = vmatpush.bf16.msrb.mxu3 %v2895_v35  ;;  %v1097_v53 = vor.u32 %v1096_v45, %v1093_v44  ;;  %v1047_v54 = vunpack.c.l.b16 %v1008_v46  ;;  %v2903_v35 = vld [vmem:[%s3105_s26 + $0x8] sm:$0xf0] }
  0x4f   : > { %758 = vmatmul.bf16.vlgmr.msrb.gmra.mxu2 %v688_v26  ;;  %952 = vmatmul.bf16.gmra.mxu3 %v876_v40  ;;  %v879_v26 = vrot.slane %v869_v21, 1  ;;  %v2829_v40 = vld [vmem:[%s3105_s26 + $0x20] sm:$0xff] }
  0x50   : > { %v495_v24 = vsel %vm467_vm1, %v490_v18, %v494_v19  ;;  %v1098_v1 = vsel %vm1054_vm2, %v1088_v20, %v1097_v53 }
  0x51   : > { %1347 = vmatpush.bf16.msra.mxu1 %v2875_v30  ;;  %1943 = vmatpush.bf16.msra.mxu0 %v2914_v33  ;;  %v3356_v30 = vld [vmem:[%s3105_s26 + $0x20] sm:$0xff]  ;;  %v880_v36 = vsel %vm685_vm0, %v877_v62, %v879_v26  ;;  %v639_v62 = vld [vmem:[%s3105_s26 + $0x28] sm:$0x1] }
  0x52   : > { %1531 = vmatpush.bf16.msra.mxu2 %v2888_v29  ;;  %v2890_v29 = vld [vmem:[%s3105_s26 + $0x8] sm:$0xf0]  ;;  %v2882_v33 = vld [vmem:[%s3532_s1 + $0x180] sm:$0xff]  ;;  %v500_v43 = vshll.u32 %v3356_v30, 16  ;;  %v678_v5 = vunpack.c.l.b16 %v639_v62  ;;  %v504_v12 = vshrl.u32 %v3356_v30, 16 }
  0x53   : > { %v2543_v30 = vld [vmem:[%s3105_s26 + $0x4] sm:$0xc] }
  0x54   : > { %v502_v52 = vrot.slane %v500_v43, 1  ;;  %v684_v11 = vpack.c.b16 %v678_v5, %v678_v5  ;;  %v1604_v5 = vld [vmem:[%s3105_s26 + $0x30] sm:$0x7] }
  0x55   : > { %1348 = vmatpush.bf16.msra.mxu1 %v2874_v39  ;;  %1944 = vmatpush.bf16.msra.mxu0 %v2913_v41  ;;  %v2680_v39 = vor.u32 %v2890_v29, %v2679_v28  ;;  %v496_v41 = vshrl.u32 %v3327_v3, 16  ;;  %v2611_v28 = vld [vmem:[%s3105_s26 + $0x8] sm:$0xc]  ;;  %v2877_v29 = vld [vmem:[%s3105_s26 + $0x8] sm:$0xf0] }
  0x56   : > { %1532 = vmatpush.bf16.msra.mxu2 %v2887_v38  ;;  %v2891_v38 = vld [vmem:[%s3105_s26 + $0x10] sm:$0xff]  ;;  %v695_v18 = vrot.slane %v684_v11, 1  ;;  %v1643_v11 = vunpack.c.l.b16 %v1604_v5 }
  0x57   : > { %v1652_v42 = vshrl.u32 %v2680_v39, 16  ;;  %v1655_v47 = vshll.u32 %v2680_v39, 16  ;;  %v498_v51 = vor.u32 %v496_v41, %v494_v19  ;;  %v506_v19 = vor.u32 %v504_v12, %v502_v52 }
  0x58   : > { %v2544_v39 = vor.u32 %v2864_v31, %v2543_v30 }
  0x59   : > { %1349 = vmatpush.bf16.msra.mxu1 %v2873_v49  ;;  %1945 = vmatpush.bf16.msra.mxu0 %v2912_v50  ;;  %v1663_v49 = vshll.u32 %v2891_v38, 16  ;;  %v693_v50 = vrot.slane %v2829_v40, 1  ;;  %v1654_v56 = vrot.slane %v1652_v42, 2  ;;  %v503_v61 = vsel %vm467_vm1, %v498_v51, %v502_v52  ;;  %v2904_v40 = vld [vmem:[%s3105_s26 + $0x10] sm:$0xff] }
  0x5a   : > { %1533 = vmatpush.bf16.msra.mxu2 %v2886_v48  ;;  %v1660_v48 = vshrl.u32 %v2891_v38, 16  ;;  %v2865_v38 = vld [vmem:[%s3105_s26 + $0xc] sm:$0xff]  ;;  %v1282_v42 = vrot.slane %v2544_v39, 2  ;;  %v2868_v39 = vld [vmem:[%s3105_s26 + $0x24] sm:$0xff] }
  0x5c   : > { %578 = vmatmul.bf16.gmra.mxu1 %v487_v59  ;;  %1174 = vmatmul.bf16.gmra.mxu0 %v1080_v60  ;;  %v1665_v59 = vrot.slane %v1663_v49, 3  ;;  %v694_v60 = vsel %vm685_vm0, %v691_v17, %v693_v50  ;;  %v1672_v17 = vshll.u32 %v2892_v10, 16  ;;  %v1879_v49 = vrot.slane %v2904_v40, 3  ;;  %v2907_v40 = vld [vmem:[%s3105_s26 + $0x28] sm:$0xff] }
  0x5d   : > { %1350 = vmatpush.bf16.msra.mxu1 %v2872_v57  ;;  %1946 = vmatpush.bf16.msra.mxu0 %v2911_v0  ;;  %v1657_v57 = vrot.slane %v1655_v47, 3  ;;  %v2908_v0 = vld [vmem:[%s3532_s1 + $0x200] sm:$0xff]  ;;  %v1283_v47 = vrot.slane %v2865_v38, 2 }
  0x5e   : > { %1534 = vmatpush.bf16.msra.mxu2 %v2885_v55  ;;  %v421_v55 = vld [vmem:[%s3105_s26 + $0x28] sm:$0x1]  ;;  %v1674_v23 = vrot.slane %v1672_v17, 3  ;;  %v2867_v17 = vld [vmem:[%s3105_s26 + $0x1c] sm:$0xff] }
  0x5f   : > { %763 = vmatmul.bf16.gmra.mxu2 %v690_v58  ;;  %957 = vmatmul.bf16.gmra.mxu3 %v878_v6  ;;  %v1662_v58 = vrot.slane %v1660_v48, 2  ;;  %v1658_v3 = vor.u32 %v1657_v57, %v1654_v56  ;;  %v2894_v57 = vld [vmem:[%s3105_s26 + $0x28] sm:$0xff] }
  0x60   : > { %v1690_v62 = vshll.u32 %v2894_v57, 16 }
  0x61   : > { %1351 = vmatpush.bf16.msra.mxu1 %v2871_v2  ;;  %1947 = vmatpush.bf16.msra.mxu0 %v2910_v8  ;;  %v1053_v2 = vpack.c.b16 %v1047_v54, %v1047_v54  ;;  %v1666_v4 = vor.u32 %v1665_v59, %v1662_v58  ;;  %v2879_v58 = vld [vmem:[%s3105_s26 + $0x18] sm:$0xff] }
  0x62   : > { %1535 = vmatpush.bf16.msra.mxu2 %v2884_v63  ;;  %v460_v63 = vunpack.c.l.b16 %v421_v55  ;;  %v2866_v59 = vld [vmem:[%s3105_s26 + $0x14] sm:$0xff] }
  0x63   : > { %v1103_v8 = vshll.u32 %v1053_v2, 16  ;;  %v1667_v9 = vsel %vm1650_vm3, %v1658_v3, %v1666_v4  ;;  %v1692_v3 = vrot.slane %v1690_v62, 3 }
  0x64   : > { %v466_v6 = vpack.c.b16 %v460_v63, %v460_v63  ;;  %v1469_v63 = vrot.slane %v2879_v58, 2 }
  0x65   : > { %1352 = vmatpush.bf16.msra.mxu1 %v2870_v27  ;;  %1948 = vmatpush.bf16.msra.mxu0 %v2909_v34  ;;  %v1105_v15 = vrot.slane %v1103_v8, 2  ;;  %v2747_v34 = vld [vmem:[%s3105_s26 + $0x8] sm:$0x8] }
  0x66   : > { %1536 = vmatpush.bf16.msra.mxu2 %v2883_v7  ;;  %v1100_v7 = vshrl.u32 %v1053_v2, 16  ;;  %v508_v13 = vshll.u32 %v466_v6, 16  ;;  %v2748_v41 = vor.u32 %v2903_v35, %v2747_v34 }
  0x68   : > { %v1102_v14 = vrot.slane %v1100_v7, 1  ;;  %v510_v20 = vrot.slane %v508_v13, 1  ;;  %v1878_v48 = vrot.slane %v2748_v41, 3  ;;  %v1649_v13 = vpack.c.b16 %v1643_v11, %v1643_v11 }
  0x69   : > { %1353 = vmatpush.bf16.msra.mxu1 %v2869_v37  ;;  %1949 = vmatpush.bf16.msra.mxu0 %v2908_v0  ;;  %v2612_v37 = vor.u32 %v2877_v29, %v2611_v28  ;;  %v1285_v0 = vrot.slane %v2866_v59, 2 }
  0x6a   : > { %1537 = vmatpush.bf16.msra.mxu2 %v2882_v33  ;;  %v1106_v21 = vor.u32 %v1105_v15, %v1102_v14  ;;  %v2893_v33 = vld [vmem:[%s3105_s26 + $0x20] sm:$0xff]  ;;  %v1880_v54 = vsel %vm1877_vm5, %v1878_v48, %v1879_v49 }
  0x6b   : > { %v1678_v43 = vshrl.u32 %v2893_v33, 16  ;;  %v1681_v44 = vshll.u32 %v2893_v33, 16  ;;  %v1466_v45 = vrot.slane %v2612_v37, 2  ;;  %v1286_v8 = vsel %vm1281_vm4, %v1283_v47, %v1285_v0  ;;  %v2880_v14 = vld [vmem:[%s3105_s26 + $0x20] sm:$0xff] }
  0x6c   : > { %583 = vmatmul.bf16.gmra.mxu1 %v495_v24  ;;  %1179 = vmatmul.bf16.gmra.mxu0 %v1089_v25  ;;  %v696_v24 = vsel %vm685_vm0, %v693_v50, %v695_v18  ;;  %v511_v25 = vsel %vm467_vm1, %v506_v19, %v510_v20  ;;  %v1107_v26 = vsel %vm1054_vm2, %v1097_v53, %v1106_v21  ;;  %v2906_v18 = vld [vmem:[%s3105_s26 + $0x20] sm:$0xff]  ;;  %v1696_v19 = vshrl.u32 %v1649_v13, 16 }
  0x6d   : > { %v1680_v50 = vrot.slane %v1678_v43, 2  ;;  %v1683_v51 = vrot.slane %v1681_v44, 3  ;;  %v1284_v53 = vsel %vm1281_vm4, %v1282_v42, %v1283_v47  ;;  %v1699_v20 = vshll.u32 %v1649_v13, 16  ;;  %v1420_v47 = vld [vmem:[%s3105_s26 + $0x30] sm:$0x3] }
  0x6e   : > { %v1471_v21 = vrot.slane %v2880_v14, 2 }
  0x6f   : > { %768 = vmatmul.bf16.gmra.mxu2 %v692_v22  ;;  %962 = vmatmul.bf16.gmra.mxu3 %v880_v36  ;;  %v1671_v22 = vrot.slane %v1669_v16, 2  ;;  %v2878_v36 = vld [vmem:[%s3105_s26 + $0x10] sm:$0xff]  ;;  %v1684_v55 = vor.u32 %v1683_v51, %v1680_v50 }
  0x70   : > { %v1467_v46 = vrot.slane %v2878_v36, 2  ;;  %v2881_v36 = vld [vmem:[%s3105_s26 + $0x28] sm:$0xff] }
  0x71   : > { %v1675_v27 = vor.u32 %v1674_v23, %v1671_v22  ;;  %v1287_v23 = vrot.slane %v2867_v17, 2  ;;  %v1473_v41 = vrot.slane %v2881_v36, 2 }
  0x72   : > { %v1468_v52 = vsel %vm1281_vm4, %v1466_v45, %v1467_v46  ;;  %v1289_v45 = vrot.slane %v2868_v39, 2 }
  0x73   : > { %v1676_v32 = vsel %vm1650_vm3, %v1666_v4, %v1675_v27  ;;  %v1685_v56 = vsel %vm1650_vm3, %v1675_v27, %v1684_v55  ;;  %v1470_v4 = vsel %vm1281_vm4, %v1467_v46, %v1469_v63  ;;  %v1472_v27 = vsel %vm1281_vm4, %v1469_v63, %v1471_v21 }
  0x74   : > { %v1288_v30 = vsel %vm1281_vm4, %v1285_v0, %v1287_v23  ;;  %v1885_v46 = vrot.slane %v2907_v40, 3  ;;  %v1474_v42 = vsel %vm1281_vm4, %v1471_v21, %v1473_v41  ;;  %v1290_v50 = vsel %vm1281_vm4, %v1287_v23, %v1289_v45 }
  0x7c   : > { %588 = vmatmul.bf16.gmra.mxu1 %v503_v61  ;;  %1184 = vmatmul.bf16.gmra.mxu0 %v1098_v1  ;;  %v1687_v61 = vshrl.u32 %v2894_v57, 16 }
  0x7e   : > { %v1689_v2 = vrot.slane %v1687_v61, 2 }
  0x7f   : > { %773 = vmatmul.bf16.gmra.mxu2 %v694_v60  ;;  %1765 = vmatmul.bf16.vlgmr.msrb.gmra.mxu3 %v1667_v9  ;;  %v2905_v60 = vld [vmem:[%s3105_s26 + $0x18] sm:$0xff] }
  0x80   : > { %v1881_v1 = vrot.slane %v2905_v60, 3  ;;  %v1693_v10 = vor.u32 %v1692_v3, %v1689_v2 }
  0x82   : > { %v1882_v9 = vsel %vm1877_vm5, %v1879_v49, %v1881_v1  ;;  %v1694_v12 = vsel %vm1650_vm3, %v1684_v55, %v1693_v10  ;;  %v1459_v55 = vunpack.c.l.b16 %v1420_v47 }
  0x84   : > { %v1465_v61 = vpack.c.b16 %v1459_v55, %v1459_v55 }
  0x86   : > { %v1475_v5 = vrot.slane %v1465_v61, 2 }
  0x8c   : > { %593 = vmatmul.bf16.gmra.mxu1 %v511_v25  ;;  %1189 = vmatmul.bf16.gmra.mxu0 %v1107_v26  ;;  %v1698_v25 = vrot.slane %v1696_v19, 2  ;;  %v1701_v26 = vrot.slane %v1699_v20, 3 }
  0x8f   : > { %778 = vmatmul.bf16.gmra.mxu2 %v696_v24  ;;  %1770 = vmatmul.bf16.gmra.mxu3 %v1676_v32  ;;  %v1883_v24 = vrot.slane %v2906_v18, 3  ;;  %v1702_v32 = vor.u32 %v1701_v26, %v1698_v25 }
  0x91   : > { %v1884_v31 = vsel %vm1877_vm5, %v1881_v1, %v1883_v24  ;;  %v1703_v35 = vsel %vm1650_vm3, %v1693_v10, %v1702_v32  ;;  %v1886_v51 = vsel %vm1877_vm5, %v1883_v24, %v1885_v46 }
  0x9c   : > { %1354 = vmatmul.bf16.vlgmr.msra.gmra.mxu1 %v1284_v53  ;;  %1950 = vmatmul.bf16.vlgmr.msra.gmra.mxu0 %v1880_v54  ;;  %v1235_v53 = vld [vmem:[%s3105_s26 + $0x2c] sm:$0x3]  ;;  %v1831_v54 = vld [vmem:[%s3105_s26 + $0x30] sm:$0x7] }
  0x9d   : > { %v1274_v58 = vunpack.c.l.b16 %v1235_v53  ;;  %v1870_v59 = vunpack.c.l.b16 %v1831_v54 }
  0x9f   : > { %1538 = vmatmul.bf16.vlgmr.msra.gmra.mxu2 %v1468_v52  ;;  %1775 = vmatmul.bf16.gmra.mxu3 %v1685_v56  ;;  %v1280_v1 = vpack.c.b16 %v1274_v58, %v1274_v58  ;;  %v1876_v2 = vpack.c.b16 %v1870_v59, %v1870_v59 }
  0xa1   : > { %v1887_v10 = vrot.slane %v1876_v2, 3 }
  0xa3   : > { %v1888_v19 = vsel %vm1877_vm5, %v1885_v46, %v1887_v10 }
  0xa9   : > { %v376_v6 = vpop.f32.mrf.mxu0  ;;  %v3411_v7 = vpop.f32.mrf.mxu1 }
  0xac   : > { %1359 = vmatmul.bf16.gmra.mxu1 %v1286_v8  ;;  %1955 = vmatmul.bf16.gmra.mxu0 %v1882_v9  ;;  %v1291_v9 = vrot.slane %v1280_v1, 2 }
  0xae   : > { %v1292_v18 = vsel %vm1281_vm4, %v1289_v45, %v1291_v9 }
  0xaf   : > { %1543 = vmatmul.bf16.gmra.mxu2 %v1470_v4  ;;  %1780 = vmatmul.bf16.gmra.mxu3 %v1694_v12  ;;  %v1476_v12 = vsel %vm1281_vm4, %v1473_v41, %v1475_v5 }
  0xb1   : > { %v378_v15 = vpop.f32.mrf.mxu0  ;;  %v3417_v16 = vpop.f32.mrf.mxu1 }
  0xb2   : > { %v943_v22 = vpop.f32.mrf.mxu3  ;;  %v3426_v33 = vpop.f32.mrf.mxu2 }
  0xb9   : > { %v381_v28 = vpop.f32.mrf.mxu0  ;;  %v3422_v29 = vpop.f32.mrf.mxu1 }
  0xba   : > { %v945_v34 = vpop.f32.mrf.mxu3  ;;  %v3434_v44 = vpop.f32.mrf.mxu2 }
  0xbc   : > { %1364 = vmatmul.bf16.gmra.mxu1 %v1288_v30  ;;  %1960 = vmatmul.bf16.gmra.mxu0 %v1884_v31 }
  0xbf   : > { %1548 = vmatmul.bf16.gmra.mxu2 %v1472_v27  ;;  %1785 = vmatmul.bf16.gmra.mxu3 %v1703_v35 }
  0xc1   : > { %v383_v37 = vpop.f32.mrf.mxu0  ;;  %v3430_v38 = vpop.f32.mrf.mxu1 }
  0xc2   : > { %v948_v43 = vpop.f32.mrf.mxu3 }
  0xc9   : > { %v574_v48 = vpop.f32.mrf.mxu1  ;;  %v1170_v49 = vpop.f32.mrf.mxu0 }
  0xca   : > { %v609_v52 = vadd.f32 %v574_v48, %v376_v6  ;;  %v950_v56 = vpop.f32.mrf.mxu3 }
  0xcc   : > { %1369 = vmatmul.bf16.gmra.mxu1 %v1290_v50  ;;  %1965 = vmatmul.bf16.gmra.mxu0 %v1886_v51 }
  0xcf   : > { %1553 = vmatmul.bf16.gmra.mxu2 %v1474_v42 }
  0xd1   : > { %v576_v63 = vpop.f32.mrf.mxu1  ;;  %v1172_v0 = vpop.f32.mrf.mxu0 }
  0xd2   : > { %v759_v57 = vpop.f32.mrf.mxu2  ;;  %v610_v3 = vadd.f32 %v576_v63, %v378_v15  ;;  %v953_v6 = vpop.f32.mrf.mxu3 }
  0xd3   : > { %v794_v60 = vadd.f32 %v759_v57, %v609_v52 }
  0xd5   : > { %v978_v62 = vadd.f32 %v943_v22, %v794_v60 }
  0xd7   : > { %v3442_v4 = vadd.f32 %v1170_v49, %v978_v62 }
  0xd9   : > { %v579_v14 = vpop.f32.mrf.mxu1  ;;  %v1175_v17 = vpop.f32.mrf.mxu0 }
  0xda   : > { %v761_v8 = vpop.f32.mrf.mxu2  ;;  %v611_v20 = vadd.f32 %v579_v14, %v381_v28  ;;  %v955_v21 = vpop.f32.mrf.mxu3 }
  0xdb   : > { %v795_v11 = vadd.f32 %v761_v8, %v610_v3 }
  0xdc   : > { %1374 = vmatmul.bf16.gmra.mxu1 %v1292_v18  ;;  %1970 = vmatmul.bf16.gmra.mxu0 %v1888_v19 }
  0xdd   : > { %v979_v13 = vadd.f32 %v945_v34, %v795_v11 }
  0xdf   : > { %1558 = vmatmul.bf16.gmra.mxu2 %v1476_v12  ;;  %v3447_v15 = vadd.f32 %v1172_v0, %v979_v13 }
  0xe1   : > { %v581_v25 = vpop.f32.mrf.mxu1  ;;  %v1177_v26 = vpop.f32.mrf.mxu0 }
  0xe2   : > { %v764_v22 = vpop.f32.mrf.mxu2  ;;  %v612_v27 = vadd.f32 %v581_v25, %v383_v37  ;;  %v958_v31 = vpop.f32.mrf.mxu3 }
  0xe3   : > { %v796_v23 = vadd.f32 %v764_v22, %v611_v20 }
  0xe5   : > { %v980_v24 = vadd.f32 %v948_v43, %v796_v23 }
  0xe7   : > { %v3449_v30 = vadd.f32 %v1175_v17, %v980_v24 }
  0xe9   : > { %v584_v36 = vpop.f32.mrf.mxu1  ;;  %v1180_v28 = vpop.f32.mrf.mxu0 }
  0xea   : > { %v766_v32 = vpop.f32.mrf.mxu2  ;;  %v613_v39 = vadd.f32 %v584_v36, %v3411_v7  ;;  %v960_v46 = vpop.f32.mrf.mxu3 }
  0xeb   : > { %v797_v34 = vadd.f32 %v766_v32, %v612_v27 }
  0xed   : > { %v981_v35 = vadd.f32 %v950_v56, %v797_v34  ;;  %v3476_v34 = vld [vmem:[%s3533_s2] ss:$0 sm:$0xff] }
  0xef   : > { %v3452_v40 = vadd.f32 %v1177_v26, %v981_v35 }
  0xf1   : > { %v586_v43 = vpop.f32.mrf.mxu1  ;;  %v1182_v47 = vpop.f32.mrf.mxu0 }
  0xf2   : > { %v769_v41 = vpop.f32.mrf.mxu2  ;;  %v614_v37 = vadd.f32 %v586_v43, %v3417_v16  ;;  %v963_v52 = vpop.f32.mrf.mxu3 }
  0xf3   : > { %v798_v45 = vadd.f32 %v769_v41, %v613_v39 }
  0xf5   : > { %v982_v42 = vadd.f32 %v953_v6, %v798_v45 }
  0xf7   : > { %v3455_v48 = vadd.f32 %v1180_v28, %v982_v42  ;;  %v3482_v28 = vld [vmem:[%s3534_s3] ss:$0 sm:$0xff] }
  0xf9   : > { %v589_v53 = vpop.f32.mrf.mxu1  ;;  %v1185_v54 = vpop.f32.mrf.mxu0 }
  0xfa   : > { %v771_v49 = vpop.f32.mrf.mxu2  ;;  %v615_v7 = vadd.f32 %v589_v53, %v3422_v29  ;;  %v965_v16 = vpop.f32.mrf.mxu3 }
  0xfb   : > { %v799_v50 = vadd.f32 %v771_v49, %v614_v37 }
  0xfd   : > { %v983_v51 = vadd.f32 %v955_v21, %v799_v50 }
  0xff   : > { %v3458_v55 = vadd.f32 %v1182_v47, %v983_v51 }
 0x101   : > { %v591_v59 = vpop.f32.mrf.mxu1  ;;  %v1187_v60 = vpop.f32.mrf.mxu0 }
 0x102   : > { %v774_v56 = vpop.f32.mrf.mxu2  ;;  %v616_v61 = vadd.f32 %v591_v59, %v3430_v38  ;;  %v1766_v6 = vpop.f32.mrf.mxu3 }
 0x103   : > { %v800_v57 = vadd.f32 %v774_v56, %v615_v7 }
 0x105   : > { %v984_v58 = vadd.f32 %v958_v31, %v800_v57 }
 0x107   : > { %v3461_v62 = vadd.f32 %v1185_v54, %v984_v58 }
 0x109   : > { %v594_v2 = vpop.f32.mrf.mxu1  ;;  %v1190_v3 = vpop.f32.mrf.mxu0 }
 0x10a   : > { %v776_v63 = vpop.f32.mrf.mxu2  ;;  %v617_v5 = vadd.f32 %v594_v2, %v3426_v33  ;;  %v1768_v18 = vpop.f32.mrf.mxu3 }
 0x10b   : > { %v801_v0 = vadd.f32 %v776_v63, %v616_v61 }
 0x10d   : > { %v985_v1 = vadd.f32 %v960_v46, %v801_v0 }
 0x10f   : > { %v3464_v29 = vadd.f32 %v1187_v60, %v985_v1 }
 0x111   : > { %v596_v11 = vpop.f32.mrf.mxu1  ;;  %v1192_v12 = vpop.f32.mrf.mxu0 }
 0x112   : > { %v779_v8 = vpop.f32.mrf.mxu2  ;;  %v618_v38 = vadd.f32 %v596_v11, %v3434_v44  ;;  %v1771_v26 = vpop.f32.mrf.mxu3 }
 0x113   : > { %v802_v9 = vadd.f32 %v779_v8, %v617_v5 }
 0x115   : > { %v986_v10 = vadd.f32 %v963_v52, %v802_v9 }
 0x117   : > { %v3467_v13 = vadd.f32 %v1190_v3, %v986_v10 }
 0x119   : > { %v1355_v20 = vpop.f32.mrf.mxu1  ;;  %v1951_v21 = vpop.f32.mrf.mxu0 }
 0x11a   : > { %v781_v14 = vpop.f32.mrf.mxu2  ;;  %v1390_v33 = vadd.f32 %v1355_v20, %v3442_v4  ;;  %v1773_v42 = vpop.f32.mrf.mxu3 }
 0x11b   : > { %v803_v17 = vadd.f32 %v781_v14, %v618_v38 }
 0x11d   : > { %v987_v19 = vadd.f32 %v965_v16, %v803_v17 }
 0x11f   : > { %v3470_v22 = vadd.f32 %v1192_v12, %v987_v19 }
 0x121   : > { %v1357_v27 = vpop.f32.mrf.mxu1  ;;  %v1953_v31 = vpop.f32.mrf.mxu0 }
 0x122   : > { %v1539_v23 = vpop.f32.mrf.mxu2  ;;  %v1391_v44 = vadd.f32 %v1357_v27, %v3447_v15  ;;  %v1776_v59 = vpop.f32.mrf.mxu3 }
 0x123   : > { %v1574_v24 = vadd.f32 %v1539_v23, %v1390_v33 }
 0x125   : > { %v1801_v25 = vadd.f32 %v1766_v6, %v1574_v24 }
 0x127   : > { %v1986_v32 = vadd.f32 %v1951_v21, %v1801_v25 }
 0x129   : > { %v2020_v4 = vmul.f32 %v3476_v34, %v1986_v32  ;;  %v1360_v41 = vpop.f32.mrf.mxu1  ;;  %v1956_v45 = vpop.f32.mrf.mxu0 }
 0x12a   : > { %v1541_v35 = vpop.f32.mrf.mxu2  ;;  %v1392_v15 = vadd.f32 %v1360_v41, %v3449_v30  ;;  %v1778_v9 = vpop.f32.mrf.mxu3 }
 0x12b   : > { %v1575_v36 = vadd.f32 %v1541_v35, %v1391_v44  ;;  %v2034_v43 = vadd.f32 %v3482_v28, %v2020_v4 }
 0x12d   : > { %v1802_v39 = vadd.f32 %v1768_v18, %v1575_v36  ;;  %v2044_v51 = vmax.f32 %v2034_v43, 0.0 }
 0x12f   : > { %v1987_v46 = vadd.f32 %v1953_v31, %v1802_v39 }
 0x131   : > { %v2021_v47 = vmul.f32 %v3476_v34, %v1987_v46  ;;  %v1362_v30 = vpop.f32.mrf.mxu1  ;;  %v1958_v54 = vpop.f32.mrf.mxu0 }
 0x132   : > { %v1544_v37 = vpop.f32.mrf.mxu2  ;;  %v1393_v56 = vadd.f32 %v1362_v30, %v3452_v40  ;;  %v1781_v23 = vpop.f32.mrf.mxu3 }
 0x133   : > { %v2035_v49 = vadd.f32 %v3482_v28, %v2021_v47  ;;  %v1576_v50 = vadd.f32 %v1544_v37, %v1392_v15 }
 0x135   : > { %v2045_v52 = vmax.f32 %v2035_v49, 0.0  ;;  %v1803_v53 = vadd.f32 %v1771_v26, %v1576_v50 }
 0x137   : > { %v2919_v7 = vpack.c.bf16 %v2045_v52, %v2044_v51  ;;  %v1988_v57 = vadd.f32 %v1956_v45, %v1803_v53 }
 0x139   : > { %2920 = vst [vmem:[%s3492_s24] sm:$0xff] %v2919_v7   ;;  %v2022_v61 = vmul.f32 %v3476_v34, %v1988_v57  ;;  %v1365_v63 = vpop.f32.mrf.mxu1  ;;  %v1961_v0 = vpop.f32.mrf.mxu0 }
 0x13a   : > { %v1546_v58 = vpop.f32.mrf.mxu2  ;;  %v1394_v2 = vadd.f32 %v1365_v63, %v3455_v48  ;;  %v1783_v15 = vpop.f32.mrf.mxu3 }
 0x13b   : > { %v1577_v60 = vadd.f32 %v1546_v58, %v1393_v56  ;;  %v2036_v3 = vadd.f32 %v3482_v28, %v2022_v61 }
 0x13d   : > { %v1804_v16 = vadd.f32 %v1773_v42, %v1577_v60  ;;  %v2046_v10 = vmax.f32 %v2036_v3, 0.0 }
 0x13f   : > { %v1989_v1 = vadd.f32 %v1958_v54, %v1804_v16 }
 0x141   : > { %v2023_v5 = vmul.f32 %v3476_v34, %v1989_v1  ;;  %v1367_v38 = vpop.f32.mrf.mxu1  ;;  %v1963_v14 = vpop.f32.mrf.mxu0 }
 0x142   : > { %v1549_v6 = vpop.f32.mrf.mxu2  ;;  %v1395_v18 = vadd.f32 %v1367_v38, %v3458_v55  ;;  %v1786_v54 = vpop.f32.mrf.mxu3 }
 0x143   : > { %v2037_v40 = vadd.f32 %v3482_v28, %v2023_v5  ;;  %v1578_v8 = vadd.f32 %v1549_v6, %v1394_v2 }
 0x145   : > { %v2047_v11 = vmax.f32 %v2037_v40, 0.0  ;;  %v1805_v12 = vadd.f32 %v1776_v59, %v1578_v8 }
 0x147   : > { %v2924_v17 = vpack.c.bf16 %v2047_v11, %v2046_v10  ;;  %v1990_v19 = vadd.f32 %v1961_v0, %v1805_v12 }
 0x149   : > { %2941 = vst [vmem:[%s3492_s24 + $0x8] sm:$0xff] %v2924_v17   ;;  %v2024_v21 = vmul.f32 %v3476_v34, %v1990_v19  ;;  %v1370_v24 = vpop.f32.mrf.mxu1  ;;  %v1966_v27 = vpop.f32.mrf.mxu0 }
 0x14a   : > { %v1551_v48 = vpop.f32.mrf.mxu2  ;;  %v1396_v26 = vadd.f32 %v1370_v24, %v3461_v62  ;;  %v1788_v5 = vpop.f32.mrf.mxu3 }
 0x14b   : > { %v1579_v20 = vadd.f32 %v1551_v48, %v1395_v18  ;;  %v2038_v31 = vadd.f32 %v3482_v28, %v2024_v21 }
 0x14d   : > { %v1806_v33 = vadd.f32 %v1778_v9, %v1579_v20  ;;  %v2048_v36 = vmax.f32 %v2038_v31, 0.0 }
 0x14f   : > { %v1991_v25 = vadd.f32 %v1963_v14, %v1806_v33 }
 0x151   : > { %v2025_v44 = vmul.f32 %v3476_v34, %v1991_v25  ;;  %v1372_v41 = vpop.f32.mrf.mxu1  ;;  %v1968_v62 = vpop.f32.mrf.mxu0 }
 0x152   : > { %v1554_v32 = vpop.f32.mrf.mxu2  ;;  %v1397_v46 = vadd.f32 %v1372_v41, %v3464_v29 }
 0x153   : > { %v2039_v55 = vadd.f32 %v3482_v28, %v2025_v44  ;;  %v1580_v35 = vadd.f32 %v1554_v32, %v1396_v26 }
 0x155   : > { %v2049_v4 = vmax.f32 %v2039_v55, 0.0  ;;  %v1807_v39 = vadd.f32 %v1781_v23, %v1580_v35 }
 0x157   : > { %v2929_v45 = vpack.c.bf16 %v2049_v4, %v2048_v36  ;;  %v1992_v42 = vadd.f32 %v1966_v27, %v1807_v39 }
 0x159   : > { %2942 = vst [vmem:[%s3492_s24 + $0x10] sm:$0xff] %v2929_v45   ;;  %v2026_v37 = vmul.f32 %v3476_v34, %v1992_v42  ;;  %v1375_v50 = vpop.f32.mrf.mxu1  ;;  %v1971_v57 = vpop.f32.mrf.mxu0 }
 0x15a   : > { %v1556_v43 = vpop.f32.mrf.mxu2  ;;  %v1398_v52 = vadd.f32 %v1375_v50, %v3467_v13 }
 0x15b   : > { %v1581_v47 = vadd.f32 %v1556_v43, %v1397_v46  ;;  %v2040_v53 = vadd.f32 %v3482_v28, %v2026_v37 }
 0x15d   : > { %v1808_v49 = vadd.f32 %v1783_v15, %v1581_v47  ;;  %v2050_v58 = vmax.f32 %v2040_v53, 0.0 }
 0x15f   : > { %v1993_v51 = vadd.f32 %v1968_v62, %v1808_v49 }
 0x161   : > { %v2027_v30 = vmul.f32 %v3476_v34, %v1993_v51  ;;  %v1377_v61 = vpop.f32.mrf.mxu1  ;;  %v1973_v40 = vpop.f32.mrf.mxu0 }
 0x162   : > { %v1559_v29 = vpop.f32.mrf.mxu2  ;;  %v1399_v0 = vadd.f32 %v1377_v61, %v3470_v22 }
 0x163   : > { %v2041_v7 = vadd.f32 %v3482_v28, %v2027_v30  ;;  %v1582_v56 = vadd.f32 %v1559_v29, %v1398_v52 }
 0x165   : > { %v2051_v59 = vmax.f32 %v2041_v7, 0.0  ;;  %v1809_v60 = vadd.f32 %v1786_v54, %v1582_v56 }
 0x167   : > { %v2934_v16 = vpack.c.bf16 %v2051_v59, %v2050_v58  ;;  %v1994_v63 = vadd.f32 %v1971_v57, %v1809_v60 }
 0x169   : > { %2943 = vst [vmem:[%s3492_s24 + $0x18] sm:$0xff] %v2934_v16   ;;  %v2028_v13 = vmul.f32 %v3476_v34, %v1994_v63 }
 0x16a   : > { %v1561_v1 = vpop.f32.mrf.mxu2 }
 0x16b   : > { %v2042_v2 = vadd.f32 %v3482_v28, %v2028_v13  ;;  %v1583_v3 = vadd.f32 %v1561_v1, %v1399_v0 }
 0x16d   : > { %v1810_v6 = vadd.f32 %v1788_v5, %v1583_v3  ;;  %v2052_v11 = vmax.f32 %v2042_v2, 0.0 }
 0x16f   : > { %v1995_v8 = vadd.f32 %v1973_v40, %v1810_v6 }
 0x171   : > { %v2029_v9 = vmul.f32 %v3476_v34, %v1995_v8 }
 0x173   : > { %v2043_v10 = vadd.f32 %v3482_v28, %v2029_v9 }
 0x175   : > { %v2053_v12 = vmax.f32 %v2043_v10, 0.0 }
 0x177   : > { %v2939_v38 = vpack.c.bf16 %v2053_v12, %v2052_v11 }
 0x179   : > { %2944 = vst [vmem:[%s3492_s24 + $0x20] sm:$0xff] %v2939_v38  }
 0x17a PF: > { %s14_s17 = sadd.s32 1, %s3011_s17   ;;  %s3536_s15 = smov %s3007_s16 }
 0x17b   : > { %p11_p5 = scmp.ge.s32.totalorder %s14_s17, 4   ;;  %s3537_s16 = smov %s3539_s18 }
 0x17d   :  { %13 = sbr.rel (!%p11_p5) target bundleno = 2 (0x2), region = 83 }

</bundles_post_ra>
